<compile_context>
chip_gen: v6e
topology: v6e:2x2x1
jax: 0.10.0
libtpu: 0.0.40
codegen_flags: <defaults>
</compile_context>

<pallas_src>
import jax
import jax.numpy as jnp
from jax.experimental import pallas as pl
from jax.experimental.pallas import tpu as pltpu


# ----------------------------- in-kernel math -----------------------------

def _sigmoid(z):
    # tanh-based logistic: no exp(-z) overflow, runs on the EUP.
    return 0.5 * (jnp.tanh(0.5 * z) + 1.0)


def _softplus(z):
    return jnp.logaddexp(z, 0.0)


def _softmax(z, axis):
    m = jnp.max(z, axis=axis, keepdims=True)
    e = jnp.exp(z - m)
    return e / jnp.sum(e, axis=axis, keepdims=True)


def _address(k, beta, g, s, gamma, memory, w_prev):
    """NTM addressing (section 3.3), vectorized over the batch.

    k:(B,M) beta,g,gamma:(B,1) s:(B,3) memory:(B,N,M) w_prev:(B,N) -> (B,N)
    """
    # content addressing: cosine similarity (clamp the norm product, torch-style)
    mem_e = memory + 1e-16                       # (B,N,M)
    k_e = k[:, None, :] + 1e-16                  # (B,1,M)
    dot = jnp.sum(mem_e * k_e, axis=-1)          # (B,N)
    n_m = jnp.sqrt(jnp.sum(mem_e * mem_e, axis=-1))
    n_k = jnp.sqrt(jnp.sum(k_e * k_e, axis=-1))
    cos = dot / jnp.maximum(n_m * n_k, 1e-8)
    wc = _softmax(beta * cos, axis=1)            # (B,N)

    # interpolation with previous weighting
    w_g = g * wc + (1.0 - g) * w_prev            # (B,N)

    # circular shift:  w_hat[m] = s0*w[m-1] + s1*w[m] + s2*w[m+1]   (mod N)
    w_m1 = jnp.concatenate([w_g[:, -1:], w_g[:, :-1]], axis=1)   # roll +1
    w_p1 = jnp.concatenate([w_g[:, 1:], w_g[:, :1]], axis=1)     # roll -1
    w_hat = s[:, 0:1] * w_m1 + s[:, 1:2] * w_g + s[:, 2:3] * w_p1

    # sharpen: x**gamma == exp(gamma*log(x)) for x>0 (w_hat is strictly positive)
    w_pow = jnp.exp(gamma * jnp.log(w_hat + 1e-16))
    return w_pow / (jnp.sum(w_pow, axis=1, keepdims=True) + 1e-16)


# --------------------------------- kernel ---------------------------------

def ntm_seq_kernel(x_ref, read0_ref, h0_ref, c0_ref, wr0_ref, ww0_ref, mem0_ref,
                   wg_ref, bg_ref, wh_ref, bh_ref, wo_ref, bo_ref,
                   o_ref, read_ref, h_ref, c_ref, wr_ref, ww_ref, mem_ref):
    """All T NTM steps inside one kernel invocation (one batch block).

    x_ref:(T,B,I)  o_ref:(T,B,O); state/memory are loop-carried values."""
    T, BB, I = x_ref.shape
    H = h0_ref.shape[1]
    M = read0_ref.shape[1]
    N = wr0_ref.shape[1]
    O = wo_ref.shape[1]

    # ---- hoisted out of the time loop: weight loads, row splits, bias bcasts ----
    wg = wg_ref[...]                    # (I+M+H, 4H), gate order [i, f, o, g]
    wg_x = wg[0:I, :]
    wg_r = wg[I:I + M, :]
    wg_h = wg[I + M:I + M + H, :]
    bg = jnp.broadcast_to(bg_ref[...], (BB, 4 * H))

    wh = wh_ref[...]                    # (H, 4M+12): write params then read params
    bh = jnp.broadcast_to(bh_ref[...], (BB, wh.shape[1]))

    wo = wo_ref[...]                    # (H+M, O)
    wo_h = wo[0:H, :]
    wo_r = wo[H:H + M, :]
    bo = jnp.broadcast_to(bo_ref[...], (BB, O))

    def step(t, carry):
        read, h, c, wr, ww, mem = carry
        x = x_ref[t]                                                     # (B, I)

        # ---- controller: LSTM gates (split dots avoid a per-step concat) ----
        gates = (jnp.dot(x, wg_x, preferred_element_type=jnp.float32)
                 + jnp.dot(read, wg_r, preferred_element_type=jnp.float32)
                 + jnp.dot(h, wg_h, preferred_element_type=jnp.float32)
                 + bg)                                                   # (B, 4H)
        sg = _sigmoid(gates[:, 0:3 * H])                                 # one sigmoid
        i_g = sg[:, 0:H]
        f_g = sg[:, H:2 * H]
        o_g = sg[:, 2 * H:3 * H]
        g_g = jnp.tanh(gates[:, 3 * H:4 * H])                            # one tanh
        c_new = f_g * c + i_g * g_g
        h_new = o_g * jnp.tanh(c_new)                                    # controller output

        # ---- fused write-head + read-head projection (one GEMM) ----
        ht = jnp.dot(h_new, wh, preferred_element_type=jnp.float32) + bh  # (B, 4M+12)

        # write head params: [k(M), beta(1), g(1), s(3), gamma(1), e(M), a(M)]
        k_w = ht[:, 0:M]
        beta_w = _softplus(ht[:, M:M + 1])
        g_w = _sigmoid(ht[:, M + 1:M + 2])
        s_w = _softmax(_softplus(ht[:, M + 2:M + 5]), axis=1)
        gamma_w = 1.0 + _softplus(ht[:, M + 5:M + 6])
        e_w = _sigmoid(ht[:, M + 6:2 * M + 6])
        a_w = ht[:, 2 * M + 6:3 * M + 6]

        # read head params: [k(M), beta(1), g(1), s(3), gamma(1)]
        r0 = 3 * M + 6
        k_r = ht[:, r0:r0 + M]
        beta_r = _softplus(ht[:, r0 + M:r0 + M + 1])
        g_r = _sigmoid(ht[:, r0 + M + 1:r0 + M + 2])
        s_r = _softmax(_softplus(ht[:, r0 + M + 2:r0 + M + 5]), axis=1)
        gamma_r = 1.0 + _softplus(ht[:, r0 + M + 5:r0 + M + 6])

        # ---- write head: address on old memory, then erase/add ----
        w_write = _address(k_w, beta_w, g_w, s_w, gamma_w, mem, ww)
        erase = w_write[:, :, None] * e_w[:, None, :]                    # (B,N,M)
        add = w_write[:, :, None] * a_w[:, None, :]                      # (B,N,M)
        mem_new = mem * (1.0 - erase) + add

        # ---- read head: address on new memory, then read vector ----
        w_read = _address(k_r, beta_r, g_r, s_r, gamma_r, mem_new, wr)
        read_new = jnp.sum(w_read[:, :, None] * mem_new, axis=1)         # (B, M)

        # ---- output ----
        o = _sigmoid(jnp.dot(h_new, wo_h, preferred_element_type=jnp.float32)
                     + jnp.dot(read_new, wo_r, preferred_element_type=jnp.float32)
                     + bo)
        o_ref[t] = o
        return (read_new, h_new, c_new, w_read, w_write, mem_new)

    carry = (read0_ref[...], h0_ref[...], c0_ref[...],
             wr0_ref[...], ww0_ref[...], mem0_ref[...])
    # T is static and small -> fully unroll the recurrence at trace time.
    # TODO(synk): for very long sequences, switch to lax.fori_loop with
    # VMEM-scratch carries to bound trace size / live ranges.
    for t in range(T):
        carry = step(t, carry)

    read, h, c, wr, ww, mem = carry
    read_ref[...] = read
    h_ref[...] = h
    c_ref[...] = c
    wr_ref[...] = wr
    ww_ref[...] = ww
    mem_ref[...] = mem


# ------------------------------ host wrappers ------------------------------

def prepare_packed_params(params, num_inputs, H, M):
    """Pack weights for the kernel (done once on the host).

    - LSTM gate columns reordered from torch [i,f,g,o] to kernel [i,f,o,g].
    - b_ih + b_hh pre-added.
    - write/read head weights fused column-wise into one (H, 4M+12) matrix."""
    def reorder_gates(mat):
        i = mat[..., 0:H]
        f = mat[..., H:2 * H]
        g = mat[..., 2 * H:3 * H]
        o = mat[..., 3 * H:4 * H]
        return jnp.concatenate([i, f, o, g], axis=-1)

    w_gates = reorder_gates(jnp.concatenate(
        [params["w_ih_t"], params["w_hh_t"]], axis=0))                   # (I+M+H, 4H)
    b_gates = reorder_gates(params["b_ih"] + params["b_hh"])             # (1, 4H)
    w_heads = jnp.concatenate(
        [params["w_write_t"], params["w_read_t"]], axis=1)               # (H, 4M+12)
    b_heads = jnp.concatenate(
        [params["b_write"], params["b_read"]], axis=1)                   # (1, 4M+12)
    return {
        "w_gates": jnp.asarray(w_gates, jnp.float32),
        "b_gates": jnp.asarray(b_gates, jnp.float32),
        "w_heads": jnp.asarray(w_heads, jnp.float32),
        "b_heads": jnp.asarray(b_heads, jnp.float32),
        "w_out": jnp.asarray(params["w_out_t"], jnp.float32),            # (H+M, O)
        "b_out": jnp.asarray(params["b_out"], jnp.float32),              # (1, O)
    }


def ntm_copy_forward_seq(x_seq, state, packed, *, batch_block=None):
    """Run T NTM steps in ONE pallas_call (time loop inside the kernel).

    grid iterates over batch blocks ("parallel"); with batch_block=None the
    whole batch is one block.  For large batches on v7x, pass a batch_block
    that is a multiple of 8 to shard across both TensorCores.

    Returns (o_seq:(T,B,O), (read, (h,c), (w_read, w_write)), memory)."""
    T, B, I = x_seq.shape
    memory = state["memory"]
    _, N, M = memory.shape
    H = state["h"].shape[1]
    wg, bg = packed["w_gates"], packed["b_gates"]
    wh, bh = packed["w_heads"], packed["b_heads"]
    wo, bo = packed["w_out"], packed["b_out"]
    O = wo.shape[1]

    bb = B if batch_block is None else batch_block
    assert B % bb == 0 and (bb == B or bb % 8 == 0), "batch_block must divide B (and be a multiple of 8 if < B)"
    nblk = B // bb

    out_shapes = (
        jax.ShapeDtypeStruct((T, B, O), jnp.float32),   # o per step
        jax.ShapeDtypeStruct((B, M), jnp.float32),      # final read
        jax.ShapeDtypeStruct((B, H), jnp.float32),      # final h
        jax.ShapeDtypeStruct((B, H), jnp.float32),      # final c
        jax.ShapeDtypeStruct((B, N), jnp.float32),      # final w_read
        jax.ShapeDtypeStruct((B, N), jnp.float32),      # final w_write
        jax.ShapeDtypeStruct((B, N, M), jnp.float32),   # final memory
    )
    grid_spec = pltpu.PrefetchScalarGridSpec(
        num_scalar_prefetch=0,
        grid=(nblk,),
        in_specs=[
            pl.BlockSpec((T, bb, I), lambda i: (0, i, 0)),     # full x sequence, VMEM-resident
            pl.BlockSpec((bb, M), lambda i: (i, 0)),           # read0
            pl.BlockSpec((bb, H), lambda i: (i, 0)),           # h0
            pl.BlockSpec((bb, H), lambda i: (i, 0)),           # c0
            pl.BlockSpec((bb, N), lambda i: (i, 0)),           # w_read0
            pl.BlockSpec((bb, N), lambda i: (i, 0)),           # w_write0
            pl.BlockSpec((bb, N, M), lambda i: (i, 0, 0)),     # memory0
            pl.BlockSpec(wg.shape, lambda i: (0, 0)),          # LSTM gate weights
            pl.BlockSpec(bg.shape, lambda i: (0, 0)),
            pl.BlockSpec(wh.shape, lambda i: (0, 0)),          # fused head weights
            pl.BlockSpec(bh.shape, lambda i: (0, 0)),
            pl.BlockSpec(wo.shape, lambda i: (0, 0)),          # output weights
            pl.BlockSpec(bo.shape, lambda i: (0, 0)),
        ],
        out_specs=(
            pl.BlockSpec((T, bb, O), lambda i: (0, i, 0)),     # full o sequence, VMEM-resident
            pl.BlockSpec((bb, M), lambda i: (i, 0)),
            pl.BlockSpec((bb, H), lambda i: (i, 0)),
            pl.BlockSpec((bb, H), lambda i: (i, 0)),
            pl.BlockSpec((bb, N), lambda i: (i, 0)),
            pl.BlockSpec((bb, N), lambda i: (i, 0)),
            pl.BlockSpec((bb, N, M), lambda i: (i, 0, 0)),
        ),
    )
    o_seq, read, h, c, w_read, w_write, mem_out = pl.pallas_call(
        ntm_seq_kernel,
        out_shape=out_shapes,
        grid_spec=grid_spec,
        compiler_params=pltpu.CompilerParams(
            dimension_semantics=("parallel",)),                # batch blocks independent
    )(x_seq, state["read"], state["h"], state["c"],
      state["w_read"], state["w_write"], memory,
      wg, bg, wh, bh, wo, bo)
    return o_seq, (read, (h, c), (w_read, w_write)), mem_out


def ntm_copy_forward(x, state, packed):
    """One NTMCopy forward step (same semantics as the module's forward)."""
    o_seq, new_state, memory = ntm_copy_forward_seq(x[None], state, packed)
    return o_seq[0], new_state, memory


# ------------------------------ initialization ------------------------------

def init_params(key, num_inputs, num_outputs, H, N, M):
    """Deterministic parameter init mirroring the module's __init__ shapes."""
    ks = jax.random.split(key, 12)
    in_lstm = num_inputs + M          # num_heads = 1

    def uniform(k, shape, bound):
        return jax.random.uniform(k, shape, jnp.float32, -bound, bound)

    lstm_b = 1.0 / jnp.sqrt(jnp.float32(H))
    xav = lambda fi, fo, gain: gain * (6.0 / (fi + fo)) ** 0.5

    params = {
        # LSTM (torch weights are (4H, in); store transposed (in, 4H))
        "w_ih_t": uniform(ks[0], (in_lstm, 4 * H), lstm_b),
        "w_hh_t": uniform(ks[1], (H, 4 * H), lstm_b),
        "b_ih": uniform(ks[2], (1, 4 * H), lstm_b),
        "b_hh": uniform(ks[3], (1, 4 * H), lstm_b),
        # write_transformer: (3M+6, H) -> transposed (H, 3M+6), xavier gain 1.4
        "w_write_t": uniform(ks[4], (H, 3 * M + 6), xav(H, 3 * M + 6, 1.4)),
        "b_write": 0.01 * jax.random.normal(ks[5], (1, 3 * M + 6), jnp.float32),
        # read_transformer: (M+6, H) -> (H, M+6), xavier gain 1.4
        "w_read_t": uniform(ks[6], (H, M + 6), xav(H, M + 6, 1.4)),
        "b_read": 0.01 * jax.random.normal(ks[7], (1, M + 6), jnp.float32),
        # output_transformer: (num_outputs, H+M) -> (H+M, num_outputs), xavier gain 1
        "w_out_t": uniform(ks[8], (H + M, num_outputs), xav(H + M, num_outputs, 1.0)),
        "b_out": 0.01 * jax.random.normal(ks[9], (1, num_outputs), jnp.float32),
        # buffers
        "mem_bias": uniform(ks[10], (N, M), 1.0 / (N + M) ** 0.5),
        "read_bias": 0.01 * jax.random.normal(ks[11], (M,), jnp.float32),
    }
    return params


def init_sequence(params, B, H, N, M):
    return {
        "h": jnp.zeros((B, H), jnp.float32),
        "c": jnp.zeros((B, H), jnp.float32),
        "read": jnp.tile(params["read_bias"][None, :], (B, 1)),
        "w_read": jnp.zeros((B, N), jnp.float32),
        "w_write": jnp.zeros((B, N), jnp.float32),
        "memory": jnp.tile(params["mem_bias"][None, :, :], (B, 1, 1)),
    }


if __name__ == "__main__":
    # NTMCopy(num_inputs=8, num_outputs=8, controller_size=32, controller_layers=1,
    #         num_heads=1, N=16, M=8, controller_type='lstm')
    B, num_inputs, num_outputs, H, N, M, T = 2, 8, 8, 32, 16, 8, 8

    key = jax.random.PRNGKey(0)
    kp, kx, ks = jax.random.split(key, 3)
    params = init_params(kp, num_inputs, num_outputs, H, N, M)
    packed = prepare_packed_params(params, num_inputs, H, M)
    state = init_sequence(params, B, H, N, M)

    # single step (the module's forward semantics)
    x = jax.random.normal(kx, (B, num_inputs), jnp.float32)
    o, (read, (h, c), (w_read, w_write)), memory = ntm_copy_forward(x, state, packed)

    # full T-step rollout in ONE pallas_call (time loop inside the kernel);
    # first step uses the same x as the single-step call above.
    x_rest = jax.random.normal(ks, (T - 1, B, num_inputs), jnp.float32)
    x_seq = jnp.concatenate([x[None], x_rest], axis=0)
    o_seq, (read_s, (h_s, c_s), (wr_s, ww_s)), mem_s = ntm_copy_forward_seq(
        x_seq, state, packed)

    jax.block_until_ready((o, read, h, c, w_read, w_write, memory,
                           o_seq, read_s, h_s, c_s, wr_s, ww_s, mem_s))

    assert o.shape == (B, num_outputs)
    assert o_seq.shape == (T, B, num_outputs)
    assert read.shape == (B, M)
    assert h.shape == (B, H) and c.shape == (B, H)
    assert w_read.shape == (B, N) and w_write.shape == (B, N)
    assert memory.shape == (B, N, M) and mem_s.shape == (B, N, M)
    assert bool(jnp.all(jnp.isfinite(o))) and bool(jnp.all(jnp.isfinite(o_seq)))
    # step 0 of the fused rollout must match the single-step call
    assert bool(jnp.allclose(o_seq[0], o, atol=1e-5))
    # head weightings must be valid distributions over memory rows
    # (exact normalization now -> tight tolerance)
    assert bool(jnp.allclose(jnp.sum(w_read, axis=1), 1.0, atol=1e-4))
    assert bool(jnp.allclose(jnp.sum(w_write, axis=1), 1.0, atol=1e-4))
    assert bool(jnp.allclose(jnp.sum(wr_s, axis=1), 1.0, atol=1e-4))
    assert bool(jnp.allclose(jnp.sum(ww_s, axis=1), 1.0, atol=1e-4))

    print("KERNEL_OK")
</pallas_src>

<mosaic_0001>
module attributes {stable_mosaic.version = 11 : i64} {
  func.func @ntm_seq_kernel(%arg0: i32, %arg1: memref<1x2x8xf32, #tpu.memory_space<vmem>>, %arg2: memref<2x8xf32, #tpu.memory_space<vmem>>, %arg3: memref<2x32xf32, #tpu.memory_space<vmem>>, %arg4: memref<2x32xf32, #tpu.memory_space<vmem>>, %arg5: memref<2x16xf32, #tpu.memory_space<vmem>>, %arg6: memref<2x16xf32, #tpu.memory_space<vmem>>, %arg7: memref<2x16x8xf32, #tpu.memory_space<vmem>>, %arg8: memref<48x128xf32, #tpu.memory_space<vmem>>, %arg9: memref<1x128xf32, #tpu.memory_space<vmem>>, %arg10: memref<32x44xf32, #tpu.memory_space<vmem>>, %arg11: memref<1x44xf32, #tpu.memory_space<vmem>>, %arg12: memref<40x8xf32, #tpu.memory_space<vmem>>, %arg13: memref<1x8xf32, #tpu.memory_space<vmem>>, %arg14: memref<1x2x8xf32, #tpu.memory_space<vmem>>, %arg15: memref<2x8xf32, #tpu.memory_space<vmem>>, %arg16: memref<2x32xf32, #tpu.memory_space<vmem>>, %arg17: memref<2x32xf32, #tpu.memory_space<vmem>>, %arg18: memref<2x16xf32, #tpu.memory_space<vmem>>, %arg19: memref<2x16xf32, #tpu.memory_space<vmem>>, %arg20: memref<2x16x8xf32, #tpu.memory_space<vmem>>) attributes {dimension_semantics = [#tpu.dimension_semantics<parallel>], iteration_bounds = array<i64: 1>, scalar_prefetch = 0 : i64, scratch_operands = 0 : i64, tpu.core_type = #tpu.core_type<tc>, window_params = [{transform_indices = @transform_0, window_bounds = array<i64: 1, 2, 8>}, {transform_indices = @transform_1, window_bounds = array<i64: 2, 8>}, {transform_indices = @transform_2, window_bounds = array<i64: 2, 32>}, {transform_indices = @transform_3, window_bounds = array<i64: 2, 32>}, {transform_indices = @transform_4, window_bounds = array<i64: 2, 16>}, {transform_indices = @transform_5, window_bounds = array<i64: 2, 16>}, {transform_indices = @transform_6, window_bounds = array<i64: 2, 16, 8>}, {pipeline_mode = #tpu.pipeline_mode<synchronous>, transform_indices = @transform_7, window_bounds = array<i64: 48, 128>}, {pipeline_mode = #tpu.pipeline_mode<synchronous>, transform_indices = @transform_8, window_bounds = array<i64: 1, 128>}, {pipeline_mode = #tpu.pipeline_mode<synchronous>, transform_indices = @transform_9, window_bounds = array<i64: 32, 44>}, {pipeline_mode = #tpu.pipeline_mode<synchronous>, transform_indices = @transform_10, window_bounds = array<i64: 1, 44>}, {pipeline_mode = #tpu.pipeline_mode<synchronous>, transform_indices = @transform_11, window_bounds = array<i64: 40, 8>}, {pipeline_mode = #tpu.pipeline_mode<synchronous>, transform_indices = @transform_12, window_bounds = array<i64: 1, 8>}, {transform_indices = @transform_13, window_bounds = array<i64: 1, 2, 8>}, {transform_indices = @transform_14, window_bounds = array<i64: 2, 8>}, {transform_indices = @transform_15, window_bounds = array<i64: 2, 32>}, {transform_indices = @transform_16, window_bounds = array<i64: 2, 32>}, {transform_indices = @transform_17, window_bounds = array<i64: 2, 16>}, {transform_indices = @transform_18, window_bounds = array<i64: 2, 16>}, {transform_indices = @transform_19, window_bounds = array<i64: 2, 16, 8>}]} {
    %c0 = arith.constant 0 : index
    %c0_0 = arith.constant 0 : index
    %0 = vector.load %arg8[%c0, %c0_0] : memref<48x128xf32, #tpu.memory_space<vmem>>, vector<48x128xf32>
    %1 = vector.extract_strided_slice %0 {offsets = [0, 0], sizes = [8, 128], strides = [1, 1]} : vector<48x128xf32> to vector<8x128xf32>
    %2 = vector.extract_strided_slice %0 {offsets = [8, 0], sizes = [8, 128], strides = [1, 1]} : vector<48x128xf32> to vector<8x128xf32>
    %3 = vector.extract_strided_slice %0 {offsets = [16, 0], sizes = [32, 128], strides = [1, 1]} : vector<48x128xf32> to vector<32x128xf32>
    %c0_1 = arith.constant 0 : index
    %c0_2 = arith.constant 0 : index
    %4 = vector.load %arg9[%c0_1, %c0_2] : memref<1x128xf32, #tpu.memory_space<vmem>>, vector<1x128xf32>
    %5 = vector.shape_cast %4 : vector<1x128xf32> to vector<1x128xf32>
    %6 = vector.broadcast %5 : vector<1x128xf32> to vector<2x128xf32>
    %c0_3 = arith.constant 0 : index
    %c0_4 = arith.constant 0 : index
    %7 = vector.load %arg10[%c0_3, %c0_4] : memref<32x44xf32, #tpu.memory_space<vmem>>, vector<32x44xf32>
    %c0_5 = arith.constant 0 : index
    %c0_6 = arith.constant 0 : index
    %8 = vector.load %arg11[%c0_5, %c0_6] : memref<1x44xf32, #tpu.memory_space<vmem>>, vector<1x44xf32>
    %9 = vector.shape_cast %8 : vector<1x44xf32> to vector<1x44xf32>
    %10 = vector.broadcast %9 : vector<1x44xf32> to vector<2x44xf32>
    %c0_7 = arith.constant 0 : index
    %c0_8 = arith.constant 0 : index
    %11 = vector.load %arg12[%c0_7, %c0_8] : memref<40x8xf32, #tpu.memory_space<vmem>>, vector<40x8xf32>
    %12 = vector.extract_strided_slice %11 {offsets = [0, 0], sizes = [32, 8], strides = [1, 1]} : vector<40x8xf32> to vector<32x8xf32>
    %13 = vector.extract_strided_slice %11 {offsets = [32, 0], sizes = [8, 8], strides = [1, 1]} : vector<40x8xf32> to vector<8x8xf32>
    %c0_9 = arith.constant 0 : index
    %c0_10 = arith.constant 0 : index
    %14 = vector.load %arg13[%c0_9, %c0_10] : memref<1x8xf32, #tpu.memory_space<vmem>>, vector<1x8xf32>
    %15 = vector.shape_cast %14 : vector<1x8xf32> to vector<1x8xf32>
    %16 = vector.broadcast %15 : vector<1x8xf32> to vector<2x8xf32>
    %c0_11 = arith.constant 0 : index
    %c0_12 = arith.constant 0 : index
    %17 = vector.load %arg2[%c0_11, %c0_12] : memref<2x8xf32, #tpu.memory_space<vmem>>, vector<2x8xf32>
    %c0_13 = arith.constant 0 : index
    %c0_14 = arith.constant 0 : index
    %18 = vector.load %arg3[%c0_13, %c0_14] : memref<2x32xf32, #tpu.memory_space<vmem>>, vector<2x32xf32>
    %c0_15 = arith.constant 0 : index
    %c0_16 = arith.constant 0 : index
    %19 = vector.load %arg4[%c0_15, %c0_16] : memref<2x32xf32, #tpu.memory_space<vmem>>, vector<2x32xf32>
    %c0_17 = arith.constant 0 : index
    %c0_18 = arith.constant 0 : index
    %20 = vector.load %arg5[%c0_17, %c0_18] : memref<2x16xf32, #tpu.memory_space<vmem>>, vector<2x16xf32>
    %c0_19 = arith.constant 0 : index
    %c0_20 = arith.constant 0 : index
    %21 = vector.load %arg6[%c0_19, %c0_20] : memref<2x16xf32, #tpu.memory_space<vmem>>, vector<2x16xf32>
    %c0_21 = arith.constant 0 : index
    %c0_22 = arith.constant 0 : index
    %c0_23 = arith.constant 0 : index
    %22 = vector.load %arg7[%c0_21, %c0_22, %c0_23] : memref<2x16x8xf32, #tpu.memory_space<vmem>>, vector<2x16x8xf32>
    %c0_24 = arith.constant 0 : index
    %c0_25 = arith.constant 0 : index
    %c0_26 = arith.constant 0 : index
    %23 = vector.load %arg1[%c0_24, %c0_25, %c0_26] : memref<1x2x8xf32, #tpu.memory_space<vmem>>, vector<1x2x8xf32>
    %24 = vector.shape_cast %23 : vector<1x2x8xf32> to vector<2x8xf32>
    %cst = arith.constant dense<0.000000e+00> : vector<2x128xf32>
    %25 = tpu.matmul %24, %1, %cst {dimension_numbers = #tpu.dot_dimension_numbers<[1], [0], [0], [1], [0, 0, 1, 1], [], []>} : vector<2x8xf32>, vector<8x128xf32>, vector<2x128xf32> -> vector<2x128xf32>
    %cst_27 = arith.constant dense<0.000000e+00> : vector<2x128xf32>
    %26 = tpu.matmul %17, %2, %cst_27 {dimension_numbers = #tpu.dot_dimension_numbers<[1], [0], [0], [1], [0, 0, 1, 1], [], []>} : vector<2x8xf32>, vector<8x128xf32>, vector<2x128xf32> -> vector<2x128xf32>
    %27 = arith.addf %25, %26 : vector<2x128xf32>
    %cst_28 = arith.constant dense<0.000000e+00> : vector<2x128xf32>
    %28 = tpu.matmul %18, %3, %cst_28 {dimension_numbers = #tpu.dot_dimension_numbers<[1], [0], [0], [1], [0, 0, 1, 1], [], []>} : vector<2x32xf32>, vector<32x128xf32>, vector<2x128xf32> -> vector<2x128xf32>
    %29 = arith.addf %27, %28 : vector<2x128xf32>
    %30 = arith.addf %29, %6 : vector<2x128xf32>
    %31 = vector.extract_strided_slice %30 {offsets = [0, 0], sizes = [2, 96], strides = [1, 1]} : vector<2x128xf32> to vector<2x96xf32>
    %cst_29 = arith.constant 5.000000e-01 : f32
    %32 = vector.broadcast %cst_29 : f32 to vector<2x96xf32>
    %33 = arith.mulf %32, %31 : vector<2x96xf32>
    %34 = math.tanh %33 : vector<2x96xf32>
    %cst_30 = arith.constant 1.000000e+00 : f32
    %35 = vector.broadcast %cst_30 : f32 to vector<2x96xf32>
    %36 = arith.addf %34, %35 : vector<2x96xf32>
    %cst_31 = arith.constant 5.000000e-01 : f32
    %37 = vector.broadcast %cst_31 : f32 to vector<2x96xf32>
    %38 = arith.mulf %37, %36 : vector<2x96xf32>
    %39 = vector.extract_strided_slice %38 {offsets = [0, 0], sizes = [2, 32], strides = [1, 1]} : vector<2x96xf32> to vector<2x32xf32>
    %40 = vector.extract_strided_slice %38 {offsets = [0, 32], sizes = [2, 32], strides = [1, 1]} : vector<2x96xf32> to vector<2x32xf32>
    %41 = vector.extract_strided_slice %38 {offsets = [0, 64], sizes = [2, 32], strides = [1, 1]} : vector<2x96xf32> to vector<2x32xf32>
    %42 = vector.extract_strided_slice %30 {offsets = [0, 96], sizes = [2, 32], strides = [1, 1]} : vector<2x128xf32> to vector<2x32xf32>
    %43 = math.tanh %42 : vector<2x32xf32>
    %44 = arith.mulf %40, %19 : vector<2x32xf32>
    %45 = arith.mulf %39, %43 : vector<2x32xf32>
    %46 = arith.addf %44, %45 : vector<2x32xf32>
    %47 = math.tanh %46 : vector<2x32xf32>
    %48 = arith.mulf %41, %47 : vector<2x32xf32>
    %cst_32 = arith.constant dense<0.000000e+00> : vector<2x44xf32>
    %49 = tpu.matmul %48, %7, %cst_32 {dimension_numbers = #tpu.dot_dimension_numbers<[1], [0], [0], [1], [0, 0, 1, 1], [], []>} : vector<2x32xf32>, vector<32x44xf32>, vector<2x44xf32> -> vector<2x44xf32>
    %50 = arith.addf %49, %10 : vector<2x44xf32>
    %51 = vector.extract_strided_slice %50 {offsets = [0, 0], sizes = [2, 8], strides = [1, 1]} : vector<2x44xf32> to vector<2x8xf32>
    %52 = vector.extract_strided_slice %50 {offsets = [0, 8], sizes = [2, 1], strides = [1, 1]} : vector<2x44xf32> to vector<2x1xf32>
    %cst_33 = arith.constant 0.000000e+00 : f32
    %53 = vector.broadcast %cst_33 : f32 to vector<2x1xf32>
    %54 = arith.maximumf %52, %53 : vector<2x1xf32>
    %55 = vector.broadcast %cst_33 : f32 to vector<2x1xf32>
    %56 = arith.subf %52, %55 : vector<2x1xf32>
    %57 = arith.cmpf one, %56, %56 : vector<2x1xf32>
    %58 = vector.broadcast %cst_33 : f32 to vector<2x1xf32>
    %59 = arith.addf %52, %58 : vector<2x1xf32>
    %60 = math.absf %56 : vector<2x1xf32>
    %cst_34 = arith.constant 0.000000e+00 : f32
    %61 = vector.broadcast %cst_34 : f32 to vector<2x1xf32>
    %62 = arith.subf %61, %60 : vector<2x1xf32>
    %63 = math.exp %62 : vector<2x1xf32>
    %64 = math.log1p %63 : vector<2x1xf32>
    %65 = arith.addf %54, %64 : vector<2x1xf32>
    %66 = arith.select %57, %59, %65 : vector<2x1xi1>, vector<2x1xf32>
    %67 = vector.extract_strided_slice %50 {offsets = [0, 9], sizes = [2, 1], strides = [1, 1]} : vector<2x44xf32> to vector<2x1xf32>
    %cst_35 = arith.constant 5.000000e-01 : f32
    %68 = vector.broadcast %cst_35 : f32 to vector<2x1xf32>
    %69 = arith.mulf %68, %67 : vector<2x1xf32>
    %70 = math.tanh %69 : vector<2x1xf32>
    %cst_36 = arith.constant 1.000000e+00 : f32
    %71 = vector.broadcast %cst_36 : f32 to vector<2x1xf32>
    %72 = arith.addf %70, %71 : vector<2x1xf32>
    %cst_37 = arith.constant 5.000000e-01 : f32
    %73 = vector.broadcast %cst_37 : f32 to vector<2x1xf32>
    %74 = arith.mulf %73, %72 : vector<2x1xf32>
    %75 = vector.extract_strided_slice %50 {offsets = [0, 10], sizes = [2, 3], strides = [1, 1]} : vector<2x44xf32> to vector<2x3xf32>
    %cst_38 = arith.constant 0.000000e+00 : f32
    %76 = vector.broadcast %cst_38 : f32 to vector<2x3xf32>
    %77 = arith.maximumf %75, %76 : vector<2x3xf32>
    %78 = vector.broadcast %cst_38 : f32 to vector<2x3xf32>
    %79 = arith.subf %75, %78 : vector<2x3xf32>
    %80 = arith.cmpf one, %79, %79 : vector<2x3xf32>
    %81 = vector.broadcast %cst_38 : f32 to vector<2x3xf32>
    %82 = arith.addf %75, %81 : vector<2x3xf32>
    %83 = math.absf %79 : vector<2x3xf32>
    %cst_39 = arith.constant 0.000000e+00 : f32
    %84 = vector.broadcast %cst_39 : f32 to vector<2x3xf32>
    %85 = arith.subf %84, %83 : vector<2x3xf32>
    %86 = math.exp %85 : vector<2x3xf32>
    %87 = math.log1p %86 : vector<2x3xf32>
    %88 = arith.addf %77, %87 : vector<2x3xf32>
    %89 = arith.select %80, %82, %88 : vector<2x3xi1>, vector<2x3xf32>
    %cst_40 = arith.constant dense<0xFF800000> : vector<2xf32>
    %90 = vector.multi_reduction <maximumf>, %89, %cst_40 [1] : vector<2x3xf32> to vector<2xf32>
    %91 = vector.shape_cast %90 : vector<2xf32> to vector<2x1xf32>
    %92 = vector.broadcast %91 : vector<2x1xf32> to vector<2x3xf32>
    %93 = arith.subf %89, %92 : vector<2x3xf32>
    %94 = math.exp %93 : vector<2x3xf32>
    %cst_41 = arith.constant dense<0.000000e+00> : vector<2xf32>
    %95 = vector.multi_reduction <add>, %94, %cst_41 [1] : vector<2x3xf32> to vector<2xf32>
    %96 = vector.shape_cast %95 : vector<2xf32> to vector<2x1xf32>
    %97 = vector.broadcast %96 : vector<2x1xf32> to vector<2x3xf32>
    %98 = arith.divf %94, %97 : vector<2x3xf32>
    %99 = vector.extract_strided_slice %50 {offsets = [0, 13], sizes = [2, 1], strides = [1, 1]} : vector<2x44xf32> to vector<2x1xf32>
    %cst_42 = arith.constant 0.000000e+00 : f32
    %100 = vector.broadcast %cst_42 : f32 to vector<2x1xf32>
    %101 = arith.maximumf %99, %100 : vector<2x1xf32>
    %102 = vector.broadcast %cst_42 : f32 to vector<2x1xf32>
    %103 = arith.subf %99, %102 : vector<2x1xf32>
    %104 = arith.cmpf one, %103, %103 : vector<2x1xf32>
    %105 = vector.broadcast %cst_42 : f32 to vector<2x1xf32>
    %106 = arith.addf %99, %105 : vector<2x1xf32>
    %107 = math.absf %103 : vector<2x1xf32>
    %cst_43 = arith.constant 0.000000e+00 : f32
    %108 = vector.broadcast %cst_43 : f32 to vector<2x1xf32>
    %109 = arith.subf %108, %107 : vector<2x1xf32>
    %110 = math.exp %109 : vector<2x1xf32>
    %111 = math.log1p %110 : vector<2x1xf32>
    %112 = arith.addf %101, %111 : vector<2x1xf32>
    %113 = arith.select %104, %106, %112 : vector<2x1xi1>, vector<2x1xf32>
    %cst_44 = arith.constant 1.000000e+00 : f32
    %114 = vector.broadcast %cst_44 : f32 to vector<2x1xf32>
    %115 = arith.addf %114, %113 : vector<2x1xf32>
    %116 = vector.extract_strided_slice %50 {offsets = [0, 14], sizes = [2, 8], strides = [1, 1]} : vector<2x44xf32> to vector<2x8xf32>
    %cst_45 = arith.constant 5.000000e-01 : f32
    %117 = vector.broadcast %cst_45 : f32 to vector<2x8xf32>
    %118 = arith.mulf %117, %116 : vector<2x8xf32>
    %119 = math.tanh %118 : vector<2x8xf32>
    %cst_46 = arith.constant 1.000000e+00 : f32
    %120 = vector.broadcast %cst_46 : f32 to vector<2x8xf32>
    %121 = arith.addf %119, %120 : vector<2x8xf32>
    %cst_47 = arith.constant 5.000000e-01 : f32
    %122 = vector.broadcast %cst_47 : f32 to vector<2x8xf32>
    %123 = arith.mulf %122, %121 : vector<2x8xf32>
    %124 = vector.extract_strided_slice %50 {offsets = [0, 22], sizes = [2, 8], strides = [1, 1]} : vector<2x44xf32> to vector<2x8xf32>
    %125 = vector.extract_strided_slice %50 {offsets = [0, 30], sizes = [2, 8], strides = [1, 1]} : vector<2x44xf32> to vector<2x8xf32>
    %126 = vector.extract_strided_slice %50 {offsets = [0, 38], sizes = [2, 1], strides = [1, 1]} : vector<2x44xf32> to vector<2x1xf32>
    %cst_48 = arith.constant 0.000000e+00 : f32
    %127 = vector.broadcast %cst_48 : f32 to vector<2x1xf32>
    %128 = arith.maximumf %126, %127 : vector<2x1xf32>
    %129 = vector.broadcast %cst_48 : f32 to vector<2x1xf32>
    %130 = arith.subf %126, %129 : vector<2x1xf32>
    %131 = arith.cmpf one, %130, %130 : vector<2x1xf32>
    %132 = vector.broadcast %cst_48 : f32 to vector<2x1xf32>
    %133 = arith.addf %126, %132 : vector<2x1xf32>
    %134 = math.absf %130 : vector<2x1xf32>
    %cst_49 = arith.constant 0.000000e+00 : f32
    %135 = vector.broadcast %cst_49 : f32 to vector<2x1xf32>
    %136 = arith.subf %135, %134 : vector<2x1xf32>
    %137 = math.exp %136 : vector<2x1xf32>
    %138 = math.log1p %137 : vector<2x1xf32>
    %139 = arith.addf %128, %138 : vector<2x1xf32>
    %140 = arith.select %131, %133, %139 : vector<2x1xi1>, vector<2x1xf32>
    %141 = vector.extract_strided_slice %50 {offsets = [0, 39], sizes = [2, 1], strides = [1, 1]} : vector<2x44xf32> to vector<2x1xf32>
    %cst_50 = arith.constant 5.000000e-01 : f32
    %142 = vector.broadcast %cst_50 : f32 to vector<2x1xf32>
    %143 = arith.mulf %142, %141 : vector<2x1xf32>
    %144 = math.tanh %143 : vector<2x1xf32>
    %cst_51 = arith.constant 1.000000e+00 : f32
    %145 = vector.broadcast %cst_51 : f32 to vector<2x1xf32>
    %146 = arith.addf %144, %145 : vector<2x1xf32>
    %cst_52 = arith.constant 5.000000e-01 : f32
    %147 = vector.broadcast %cst_52 : f32 to vector<2x1xf32>
    %148 = arith.mulf %147, %146 : vector<2x1xf32>
    %149 = vector.extract_strided_slice %50 {offsets = [0, 40], sizes = [2, 3], strides = [1, 1]} : vector<2x44xf32> to vector<2x3xf32>
    %cst_53 = arith.constant 0.000000e+00 : f32
    %150 = vector.broadcast %cst_53 : f32 to vector<2x3xf32>
    %151 = arith.maximumf %149, %150 : vector<2x3xf32>
    %152 = vector.broadcast %cst_53 : f32 to vector<2x3xf32>
    %153 = arith.subf %149, %152 : vector<2x3xf32>
    %154 = arith.cmpf one, %153, %153 : vector<2x3xf32>
    %155 = vector.broadcast %cst_53 : f32 to vector<2x3xf32>
    %156 = arith.addf %149, %155 : vector<2x3xf32>
    %157 = math.absf %153 : vector<2x3xf32>
    %cst_54 = arith.constant 0.000000e+00 : f32
    %158 = vector.broadcast %cst_54 : f32 to vector<2x3xf32>
    %159 = arith.subf %158, %157 : vector<2x3xf32>
    %160 = math.exp %159 : vector<2x3xf32>
    %161 = math.log1p %160 : vector<2x3xf32>
    %162 = arith.addf %151, %161 : vector<2x3xf32>
    %163 = arith.select %154, %156, %162 : vector<2x3xi1>, vector<2x3xf32>
    %cst_55 = arith.constant dense<0xFF800000> : vector<2xf32>
    %164 = vector.multi_reduction <maximumf>, %163, %cst_55 [1] : vector<2x3xf32> to vector<2xf32>
    %165 = vector.shape_cast %164 : vector<2xf32> to vector<2x1xf32>
    %166 = vector.broadcast %165 : vector<2x1xf32> to vector<2x3xf32>
    %167 = arith.subf %163, %166 : vector<2x3xf32>
    %168 = math.exp %167 : vector<2x3xf32>
    %cst_56 = arith.constant dense<0.000000e+00> : vector<2xf32>
    %169 = vector.multi_reduction <add>, %168, %cst_56 [1] : vector<2x3xf32> to vector<2xf32>
    %170 = vector.shape_cast %169 : vector<2xf32> to vector<2x1xf32>
    %171 = vector.broadcast %170 : vector<2x1xf32> to vector<2x3xf32>
    %172 = arith.divf %168, %171 : vector<2x3xf32>
    %173 = vector.extract_strided_slice %50 {offsets = [0, 43], sizes = [2, 1], strides = [1, 1]} : vector<2x44xf32> to vector<2x1xf32>
    %cst_57 = arith.constant 0.000000e+00 : f32
    %174 = vector.broadcast %cst_57 : f32 to vector<2x1xf32>
    %175 = arith.maximumf %173, %174 : vector<2x1xf32>
    %176 = vector.broadcast %cst_57 : f32 to vector<2x1xf32>
    %177 = arith.subf %173, %176 : vector<2x1xf32>
    %178 = arith.cmpf one, %177, %177 : vector<2x1xf32>
    %179 = vector.broadcast %cst_57 : f32 to vector<2x1xf32>
    %180 = arith.addf %173, %179 : vector<2x1xf32>
    %181 = math.absf %177 : vector<2x1xf32>
    %cst_58 = arith.constant 0.000000e+00 : f32
    %182 = vector.broadcast %cst_58 : f32 to vector<2x1xf32>
    %183 = arith.subf %182, %181 : vector<2x1xf32>
    %184 = math.exp %183 : vector<2x1xf32>
    %185 = math.log1p %184 : vector<2x1xf32>
    %186 = arith.addf %175, %185 : vector<2x1xf32>
    %187 = arith.select %178, %180, %186 : vector<2x1xi1>, vector<2x1xf32>
    %cst_59 = arith.constant 1.000000e+00 : f32
    %188 = vector.broadcast %cst_59 : f32 to vector<2x1xf32>
    %189 = arith.addf %188, %187 : vector<2x1xf32>
    %cst_60 = arith.constant 1.000000e-16 : f32
    %190 = vector.broadcast %cst_60 : f32 to vector<2x16x8xf32>
    %191 = arith.addf %22, %190 : vector<2x16x8xf32>
    %192 = vector.shape_cast %51 : vector<2x8xf32> to vector<2x1x8xf32>
    %cst_61 = arith.constant 1.000000e-16 : f32
    %193 = vector.broadcast %cst_61 : f32 to vector<2x1x8xf32>
    %194 = arith.addf %192, %193 : vector<2x1x8xf32>
    %195 = vector.broadcast %194 : vector<2x1x8xf32> to vector<2x16x8xf32>
    %196 = arith.mulf %191, %195 : vector<2x16x8xf32>
    %cst_62 = arith.constant dense<0.000000e+00> : vector<2x16xf32>
    %197 = vector.multi_reduction <add>, %196, %cst_62 [2] : vector<2x16x8xf32> to vector<2x16xf32>
    %198 = arith.mulf %191, %191 : vector<2x16x8xf32>
    %cst_63 = arith.constant dense<0.000000e+00> : vector<2x16xf32>
    %199 = vector.multi_reduction <add>, %198, %cst_63 [2] : vector<2x16x8xf32> to vector<2x16xf32>
    %200 = math.sqrt %199 : vector<2x16xf32>
    %201 = arith.mulf %194, %194 : vector<2x1x8xf32>
    %cst_64 = arith.constant dense<0.000000e+00> : vector<2x1xf32>
    %202 = vector.multi_reduction <add>, %201, %cst_64 [2] : vector<2x1x8xf32> to vector<2x1xf32>
    %203 = math.sqrt %202 : vector<2x1xf32>
    %204 = vector.broadcast %203 : vector<2x1xf32> to vector<2x16xf32>
    %205 = arith.mulf %200, %204 : vector<2x16xf32>
    %cst_65 = arith.constant 9.99999993E-9 : f32
    %206 = vector.broadcast %cst_65 : f32 to vector<2x16xf32>
    %207 = arith.maximumf %205, %206 : vector<2x16xf32>
    %208 = arith.divf %197, %207 : vector<2x16xf32>
    %209 = vector.broadcast %66 : vector<2x1xf32> to vector<2x16xf32>
    %210 = arith.mulf %209, %208 : vector<2x16xf32>
    %cst_66 = arith.constant dense<0xFF800000> : vector<2xf32>
    %211 = vector.multi_reduction <maximumf>, %210, %cst_66 [1] : vector<2x16xf32> to vector<2xf32>
    %212 = vector.shape_cast %211 : vector<2xf32> to vector<2x1xf32>
    %213 = vector.broadcast %212 : vector<2x1xf32> to vector<2x16xf32>
    %214 = arith.subf %210, %213 : vector<2x16xf32>
    %215 = math.exp %214 : vector<2x16xf32>
    %cst_67 = arith.constant dense<0.000000e+00> : vector<2xf32>
    %216 = vector.multi_reduction <add>, %215, %cst_67 [1] : vector<2x16xf32> to vector<2xf32>
    %217 = vector.shape_cast %216 : vector<2xf32> to vector<2x1xf32>
    %218 = vector.broadcast %217 : vector<2x1xf32> to vector<2x16xf32>
    %219 = arith.divf %215, %218 : vector<2x16xf32>
    %220 = vector.broadcast %74 : vector<2x1xf32> to vector<2x16xf32>
    %221 = arith.mulf %220, %219 : vector<2x16xf32>
    %cst_68 = arith.constant 1.000000e+00 : f32
    %222 = vector.broadcast %cst_68 : f32 to vector<2x1xf32>
    %223 = arith.subf %222, %74 : vector<2x1xf32>
    %224 = vector.broadcast %223 : vector<2x1xf32> to vector<2x16xf32>
    %225 = arith.mulf %224, %21 : vector<2x16xf32>
    %226 = arith.addf %221, %225 : vector<2x16xf32>
    %227 = vector.extract_strided_slice %226 {offsets = [0, 15], sizes = [2, 1], strides = [1, 1]} : vector<2x16xf32> to vector<2x1xf32>
    %228 = vector.extract_strided_slice %226 {offsets = [0, 0], sizes = [2, 15], strides = [1, 1]} : vector<2x16xf32> to vector<2x15xf32>
    %229 = tpu.concatenate %227, %228 in 1 : vector<2x1xf32>, vector<2x15xf32> -> vector<2x16xf32>
    %230 = vector.extract_strided_slice %226 {offsets = [0, 1], sizes = [2, 15], strides = [1, 1]} : vector<2x16xf32> to vector<2x15xf32>
    %231 = vector.extract_strided_slice %226 {offsets = [0, 0], sizes = [2, 1], strides = [1, 1]} : vector<2x16xf32> to vector<2x1xf32>
    %232 = tpu.concatenate %230, %231 in 1 : vector<2x15xf32>, vector<2x1xf32> -> vector<2x16xf32>
    %233 = vector.extract_strided_slice %98 {offsets = [0, 0], sizes = [2, 1], strides = [1, 1]} : vector<2x3xf32> to vector<2x1xf32>
    %234 = vector.broadcast %233 : vector<2x1xf32> to vector<2x16xf32>
    %235 = arith.mulf %234, %229 : vector<2x16xf32>
    %236 = vector.extract_strided_slice %98 {offsets = [0, 1], sizes = [2, 1], strides = [1, 1]} : vector<2x3xf32> to vector<2x1xf32>
    %237 = vector.broadcast %236 : vector<2x1xf32> to vector<2x16xf32>
    %238 = arith.mulf %237, %226 : vector<2x16xf32>
    %239 = arith.addf %235, %238 : vector<2x16xf32>
    %240 = vector.extract_strided_slice %98 {offsets = [0, 2], sizes = [2, 1], strides = [1, 1]} : vector<2x3xf32> to vector<2x1xf32>
    %241 = vector.broadcast %240 : vector<2x1xf32> to vector<2x16xf32>
    %242 = arith.mulf %241, %232 : vector<2x16xf32>
    %243 = arith.addf %239, %242 : vector<2x16xf32>
    %cst_69 = arith.constant 1.000000e-16 : f32
    %244 = vector.broadcast %cst_69 : f32 to vector<2x16xf32>
    %245 = arith.addf %243, %244 : vector<2x16xf32>
    %246 = math.log %245 : vector<2x16xf32>
    %247 = vector.broadcast %115 : vector<2x1xf32> to vector<2x16xf32>
    %248 = arith.mulf %247, %246 : vector<2x16xf32>
    %249 = math.exp %248 : vector<2x16xf32>
    %cst_70 = arith.constant dense<0.000000e+00> : vector<2xf32>
    %250 = vector.multi_reduction <add>, %249, %cst_70 [1] : vector<2x16xf32> to vector<2xf32>
    %251 = vector.shape_cast %250 : vector<2xf32> to vector<2x1xf32>
    %cst_71 = arith.constant 1.000000e-16 : f32
    %252 = vector.broadcast %cst_71 : f32 to vector<2x1xf32>
    %253 = arith.addf %251, %252 : vector<2x1xf32>
    %254 = vector.broadcast %253 : vector<2x1xf32> to vector<2x16xf32>
    %255 = arith.divf %249, %254 : vector<2x16xf32>
    %256 = vector.shape_cast %255 : vector<2x16xf32> to vector<2x16x1xf32>
    %257 = vector.shape_cast %123 : vector<2x8xf32> to vector<2x1x8xf32>
    %258 = vector.broadcast %256 : vector<2x16x1xf32> to vector<2x16x8xf32>
    %259 = vector.broadcast %257 : vector<2x1x8xf32> to vector<2x16x8xf32>
    %260 = arith.mulf %258, %259 : vector<2x16x8xf32>
    %261 = vector.shape_cast %255 : vector<2x16xf32> to vector<2x16x1xf32>
    %262 = vector.shape_cast %124 : vector<2x8xf32> to vector<2x1x8xf32>
    %263 = vector.broadcast %261 : vector<2x16x1xf32> to vector<2x16x8xf32>
    %264 = vector.broadcast %262 : vector<2x1x8xf32> to vector<2x16x8xf32>
    %265 = arith.mulf %263, %264 : vector<2x16x8xf32>
    %cst_72 = arith.constant 1.000000e+00 : f32
    %266 = vector.broadcast %cst_72 : f32 to vector<2x16x8xf32>
    %267 = arith.subf %266, %260 : vector<2x16x8xf32>
    %268 = arith.mulf %22, %267 : vector<2x16x8xf32>
    %269 = arith.addf %268, %265 : vector<2x16x8xf32>
    %cst_73 = arith.constant 1.000000e-16 : f32
    %270 = vector.broadcast %cst_73 : f32 to vector<2x16x8xf32>
    %271 = arith.addf %269, %270 : vector<2x16x8xf32>
    %272 = vector.shape_cast %125 : vector<2x8xf32> to vector<2x1x8xf32>
    %cst_74 = arith.constant 1.000000e-16 : f32
    %273 = vector.broadcast %cst_74 : f32 to vector<2x1x8xf32>
    %274 = arith.addf %272, %273 : vector<2x1x8xf32>
    %275 = vector.broadcast %274 : vector<2x1x8xf32> to vector<2x16x8xf32>
    %276 = arith.mulf %271, %275 : vector<2x16x8xf32>
    %cst_75 = arith.constant dense<0.000000e+00> : vector<2x16xf32>
    %277 = vector.multi_reduction <add>, %276, %cst_75 [2] : vector<2x16x8xf32> to vector<2x16xf32>
    %278 = arith.mulf %271, %271 : vector<2x16x8xf32>
    %cst_76 = arith.constant dense<0.000000e+00> : vector<2x16xf32>
    %279 = vector.multi_reduction <add>, %278, %cst_76 [2] : vector<2x16x8xf32> to vector<2x16xf32>
    %280 = math.sqrt %279 : vector<2x16xf32>
    %281 = arith.mulf %274, %274 : vector<2x1x8xf32>
    %cst_77 = arith.constant dense<0.000000e+00> : vector<2x1xf32>
    %282 = vector.multi_reduction <add>, %281, %cst_77 [2] : vector<2x1x8xf32> to vector<2x1xf32>
    %283 = math.sqrt %282 : vector<2x1xf32>
    %284 = vector.broadcast %283 : vector<2x1xf32> to vector<2x16xf32>
    %285 = arith.mulf %280, %284 : vector<2x16xf32>
    %cst_78 = arith.constant 9.99999993E-9 : f32
    %286 = vector.broadcast %cst_78 : f32 to vector<2x16xf32>
    %287 = arith.maximumf %285, %286 : vector<2x16xf32>
    %288 = arith.divf %277, %287 : vector<2x16xf32>
    %289 = vector.broadcast %140 : vector<2x1xf32> to vector<2x16xf32>
    %290 = arith.mulf %289, %288 : vector<2x16xf32>
    %cst_79 = arith.constant dense<0xFF800000> : vector<2xf32>
    %291 = vector.multi_reduction <maximumf>, %290, %cst_79 [1] : vector<2x16xf32> to vector<2xf32>
    %292 = vector.shape_cast %291 : vector<2xf32> to vector<2x1xf32>
    %293 = vector.broadcast %292 : vector<2x1xf32> to vector<2x16xf32>
    %294 = arith.subf %290, %293 : vector<2x16xf32>
    %295 = math.exp %294 : vector<2x16xf32>
    %cst_80 = arith.constant dense<0.000000e+00> : vector<2xf32>
    %296 = vector.multi_reduction <add>, %295, %cst_80 [1] : vector<2x16xf32> to vector<2xf32>
    %297 = vector.shape_cast %296 : vector<2xf32> to vector<2x1xf32>
    %298 = vector.broadcast %297 : vector<2x1xf32> to vector<2x16xf32>
    %299 = arith.divf %295, %298 : vector<2x16xf32>
    %300 = vector.broadcast %148 : vector<2x1xf32> to vector<2x16xf32>
    %301 = arith.mulf %300, %299 : vector<2x16xf32>
    %cst_81 = arith.constant 1.000000e+00 : f32
    %302 = vector.broadcast %cst_81 : f32 to vector<2x1xf32>
    %303 = arith.subf %302, %148 : vector<2x1xf32>
    %304 = vector.broadcast %303 : vector<2x1xf32> to vector<2x16xf32>
    %305 = arith.mulf %304, %20 : vector<2x16xf32>
    %306 = arith.addf %301, %305 : vector<2x16xf32>
    %307 = vector.extract_strided_slice %306 {offsets = [0, 15], sizes = [2, 1], strides = [1, 1]} : vector<2x16xf32> to vector<2x1xf32>
    %308 = vector.extract_strided_slice %306 {offsets = [0, 0], sizes = [2, 15], strides = [1, 1]} : vector<2x16xf32> to vector<2x15xf32>
    %309 = tpu.concatenate %307, %308 in 1 : vector<2x1xf32>, vector<2x15xf32> -> vector<2x16xf32>
    %310 = vector.extract_strided_slice %306 {offsets = [0, 1], sizes = [2, 15], strides = [1, 1]} : vector<2x16xf32> to vector<2x15xf32>
    %311 = vector.extract_strided_slice %306 {offsets = [0, 0], sizes = [2, 1], strides = [1, 1]} : vector<2x16xf32> to vector<2x1xf32>
    %312 = tpu.concatenate %310, %311 in 1 : vector<2x15xf32>, vector<2x1xf32> -> vector<2x16xf32>
    %313 = vector.extract_strided_slice %172 {offsets = [0, 0], sizes = [2, 1], strides = [1, 1]} : vector<2x3xf32> to vector<2x1xf32>
    %314 = vector.broadcast %313 : vector<2x1xf32> to vector<2x16xf32>
    %315 = arith.mulf %314, %309 : vector<2x16xf32>
    %316 = vector.extract_strided_slice %172 {offsets = [0, 1], sizes = [2, 1], strides = [1, 1]} : vector<2x3xf32> to vector<2x1xf32>
    %317 = vector.broadcast %316 : vector<2x1xf32> to vector<2x16xf32>
    %318 = arith.mulf %317, %306 : vector<2x16xf32>
    %319 = arith.addf %315, %318 : vector<2x16xf32>
    %320 = vector.extract_strided_slice %172 {offsets = [0, 2], sizes = [2, 1], strides = [1, 1]} : vector<2x3xf32> to vector<2x1xf32>
    %321 = vector.broadcast %320 : vector<2x1xf32> to vector<2x16xf32>
    %322 = arith.mulf %321, %312 : vector<2x16xf32>
    %323 = arith.addf %319, %322 : vector<2x16xf32>
    %cst_82 = arith.constant 1.000000e-16 : f32
    %324 = vector.broadcast %cst_82 : f32 to vector<2x16xf32>
    %325 = arith.addf %323, %324 : vector<2x16xf32>
    %326 = math.log %325 : vector<2x16xf32>
    %327 = vector.broadcast %189 : vector<2x1xf32> to vector<2x16xf32>
    %328 = arith.mulf %327, %326 : vector<2x16xf32>
    %329 = math.exp %328 : vector<2x16xf32>
    %cst_83 = arith.constant dense<0.000000e+00> : vector<2xf32>
    %330 = vector.multi_reduction <add>, %329, %cst_83 [1] : vector<2x16xf32> to vector<2xf32>
    %331 = vector.shape_cast %330 : vector<2xf32> to vector<2x1xf32>
    %cst_84 = arith.constant 1.000000e-16 : f32
    %332 = vector.broadcast %cst_84 : f32 to vector<2x1xf32>
    %333 = arith.addf %331, %332 : vector<2x1xf32>
    %334 = vector.broadcast %333 : vector<2x1xf32> to vector<2x16xf32>
    %335 = arith.divf %329, %334 : vector<2x16xf32>
    %336 = vector.shape_cast %335 : vector<2x16xf32> to vector<2x16x1xf32>
    %337 = vector.broadcast %336 : vector<2x16x1xf32> to vector<2x16x8xf32>
    %338 = arith.mulf %337, %269 : vector<2x16x8xf32>
    %cst_85 = arith.constant dense<0.000000e+00> : vector<2x8xf32>
    %339 = vector.multi_reduction <add>, %338, %cst_85 [1] : vector<2x16x8xf32> to vector<2x8xf32>
    %cst_86 = arith.constant dense<0.000000e+00> : vector<2x8xf32>
    %340 = tpu.matmul %48, %12, %cst_86 {dimension_numbers = #tpu.dot_dimension_numbers<[1], [0], [0], [1], [0, 0, 1, 1], [], []>} : vector<2x32xf32>, vector<32x8xf32>, vector<2x8xf32> -> vector<2x8xf32>
    %cst_87 = arith.constant dense<0.000000e+00> : vector<2x8xf32>
    %341 = tpu.matmul %339, %13, %cst_87 {dimension_numbers = #tpu.dot_dimension_numbers<[1], [0], [0], [1], [0, 0, 1, 1], [], []>} : vector<2x8xf32>, vector<8x8xf32>, vector<2x8xf32> -> vector<2x8xf32>
    %342 = arith.addf %340, %341 : vector<2x8xf32>
    %343 = arith.addf %342, %16 : vector<2x8xf32>
    %cst_88 = arith.constant 5.000000e-01 : f32
    %344 = vector.broadcast %cst_88 : f32 to vector<2x8xf32>
    %345 = arith.mulf %344, %343 : vector<2x8xf32>
    %346 = math.tanh %345 : vector<2x8xf32>
    %cst_89 = arith.constant 1.000000e+00 : f32
    %347 = vector.broadcast %cst_89 : f32 to vector<2x8xf32>
    %348 = arith.addf %346, %347 : vector<2x8xf32>
    %cst_90 = arith.constant 5.000000e-01 : f32
    %349 = vector.broadcast %cst_90 : f32 to vector<2x8xf32>
    %350 = arith.mulf %349, %348 : vector<2x8xf32>
    %c0_91 = arith.constant 0 : index
    %c0_92 = arith.constant 0 : index
    %c0_93 = arith.constant 0 : index
    %351 = vector.load %arg14[%c0_91, %c0_92, %c0_93] : memref<1x2x8xf32, #tpu.memory_space<vmem>>, vector<1x2x8xf32>
    %352 = vector.shape_cast %351 : vector<1x2x8xf32> to vector<2x8xf32>
    %353 = vector.shape_cast %350 : vector<2x8xf32> to vector<1x2x8xf32>
    tpu.vector_store %arg14[%c0_91, %c0_92, %c0_93], %353 {strides = array<i32>} : memref<1x2x8xf32, #tpu.memory_space<vmem>>, vector<1x2x8xf32>,
    %c0_94 = arith.constant 0 : index
    %c0_95 = arith.constant 0 : index
    %354 = vector.load %arg15[%c0_94, %c0_95] : memref<2x8xf32, #tpu.memory_space<vmem>>, vector<2x8xf32>
    tpu.vector_store %arg15[%c0_94, %c0_95], %339 {strides = array<i32>} : memref<2x8xf32, #tpu.memory_space<vmem>>, vector<2x8xf32>,
    %c0_96 = arith.constant 0 : index
    %c0_97 = arith.constant 0 : index
    %355 = vector.load %arg16[%c0_96, %c0_97] : memref<2x32xf32, #tpu.memory_space<vmem>>, vector<2x32xf32>
    tpu.vector_store %arg16[%c0_96, %c0_97], %48 {strides = array<i32>} : memref<2x32xf32, #tpu.memory_space<vmem>>, vector<2x32xf32>,
    %c0_98 = arith.constant 0 : index
    %c0_99 = arith.constant 0 : index
    %356 = vector.load %arg17[%c0_98, %c0_99] : memref<2x32xf32, #tpu.memory_space<vmem>>, vector<2x32xf32>
    tpu.vector_store %arg17[%c0_98, %c0_99], %46 {strides = array<i32>} : memref<2x32xf32, #tpu.memory_space<vmem>>, vector<2x32xf32>,
    %c0_100 = arith.constant 0 : index
    %c0_101 = arith.constant 0 : index
    %357 = vector.load %arg18[%c0_100, %c0_101] : memref<2x16xf32, #tpu.memory_space<vmem>>, vector<2x16xf32>
    tpu.vector_store %arg18[%c0_100, %c0_101], %335 {strides = array<i32>} : memref<2x16xf32, #tpu.memory_space<vmem>>, vector<2x16xf32>,
    %c0_102 = arith.constant 0 : index
    %c0_103 = arith.constant 0 : index
    %358 = vector.load %arg19[%c0_102, %c0_103] : memref<2x16xf32, #tpu.memory_space<vmem>>, vector<2x16xf32>
    tpu.vector_store %arg19[%c0_102, %c0_103], %255 {strides = array<i32>} : memref<2x16xf32, #tpu.memory_space<vmem>>, vector<2x16xf32>,
    %c0_104 = arith.constant 0 : index
    %c0_105 = arith.constant 0 : index
    %c0_106 = arith.constant 0 : index
    %359 = vector.load %arg20[%c0_104, %c0_105, %c0_106] : memref<2x16x8xf32, #tpu.memory_space<vmem>>, vector<2x16x8xf32>
    tpu.vector_store %arg20[%c0_104, %c0_105, %c0_106], %269 {strides = array<i32>} : memref<2x16x8xf32, #tpu.memory_space<vmem>>, vector<2x16x8xf32>,
    return
  }
  func.func @transform_0(%arg0: i32) -> (i32, i32, i32) {
    %c0_i32 = arith.constant 0 : i32
    %c0_i32_0 = arith.constant 0 : i32
    %c0_i32_1 = arith.constant 0 : i32
    return %c0_i32, %arg0, %c0_i32_0 : i32, i32, i32
  }
  func.func @transform_1(%arg0: i32) -> (i32, i32) {
    %c0_i32 = arith.constant 0 : i32
    %c0_i32_0 = arith.constant 0 : i32
    return %arg0, %c0_i32 : i32, i32
  }
  func.func @transform_2(%arg0: i32) -> (i32, i32) {
    %c0_i32 = arith.constant 0 : i32
    %c0_i32_0 = arith.constant 0 : i32
    return %arg0, %c0_i32 : i32, i32
  }
  func.func @transform_3(%arg0: i32) -> (i32, i32) {
    %c0_i32 = arith.constant 0 : i32
    %c0_i32_0 = arith.constant 0 : i32
    return %arg0, %c0_i32 : i32, i32
  }
  func.func @transform_4(%arg0: i32) -> (i32, i32) {
    %c0_i32 = arith.constant 0 : i32
    %c0_i32_0 = arith.constant 0 : i32
    return %arg0, %c0_i32 : i32, i32
  }
  func.func @transform_5(%arg0: i32) -> (i32, i32) {
    %c0_i32 = arith.constant 0 : i32
    %c0_i32_0 = arith.constant 0 : i32
    return %arg0, %c0_i32 : i32, i32
  }
  func.func @transform_6(%arg0: i32) -> (i32, i32, i32) {
    %c0_i32 = arith.constant 0 : i32
    %c0_i32_0 = arith.constant 0 : i32
    %c0_i32_1 = arith.constant 0 : i32
    return %arg0, %c0_i32, %c0_i32_0 : i32, i32, i32
  }
  func.func @transform_7(%arg0: i32) -> (i32, i32) {
    %c0_i32 = arith.constant 0 : i32
    %c0_i32_0 = arith.constant 0 : i32
    %c0_i32_1 = arith.constant 0 : i32
    return %c0_i32, %c0_i32_0 : i32, i32
  }
  func.func @transform_8(%arg0: i32) -> (i32, i32) {
    %c0_i32 = arith.constant 0 : i32
    %c0_i32_0 = arith.constant 0 : i32
    %c0_i32_1 = arith.constant 0 : i32
    return %c0_i32, %c0_i32_0 : i32, i32
  }
  func.func @transform_9(%arg0: i32) -> (i32, i32) {
    %c0_i32 = arith.constant 0 : i32
    %c0_i32_0 = arith.constant 0 : i32
    %c0_i32_1 = arith.constant 0 : i32
    return %c0_i32, %c0_i32_0 : i32, i32
  }
  func.func @transform_10(%arg0: i32) -> (i32, i32) {
    %c0_i32 = arith.constant 0 : i32
    %c0_i32_0 = arith.constant 0 : i32
    %c0_i32_1 = arith.constant 0 : i32
    return %c0_i32, %c0_i32_0 : i32, i32
  }
  func.func @transform_11(%arg0: i32) -> (i32, i32) {
    %c0_i32 = arith.constant 0 : i32
    %c0_i32_0 = arith.constant 0 : i32
    %c0_i32_1 = arith.constant 0 : i32
    return %c0_i32, %c0_i32_0 : i32, i32
  }
  func.func @transform_12(%arg0: i32) -> (i32, i32) {
    %c0_i32 = arith.constant 0 : i32
    %c0_i32_0 = arith.constant 0 : i32
    %c0_i32_1 = arith.constant 0 : i32
    return %c0_i32, %c0_i32_0 : i32, i32
  }
  func.func @transform_13(%arg0: i32) -> (i32, i32, i32) {
    %c0_i32 = arith.constant 0 : i32
    %c0_i32_0 = arith.constant 0 : i32
    %c0_i32_1 = arith.constant 0 : i32
    return %c0_i32, %arg0, %c0_i32_0 : i32, i32, i32
  }
  func.func @transform_14(%arg0: i32) -> (i32, i32) {
    %c0_i32 = arith.constant 0 : i32
    %c0_i32_0 = arith.constant 0 : i32
    return %arg0, %c0_i32 : i32, i32
  }
  func.func @transform_15(%arg0: i32) -> (i32, i32) {
    %c0_i32 = arith.constant 0 : i32
    %c0_i32_0 = arith.constant 0 : i32
    return %arg0, %c0_i32 : i32, i32
  }
  func.func @transform_16(%arg0: i32) -> (i32, i32) {
    %c0_i32 = arith.constant 0 : i32
    %c0_i32_0 = arith.constant 0 : i32
    return %arg0, %c0_i32 : i32, i32
  }
  func.func @transform_17(%arg0: i32) -> (i32, i32) {
    %c0_i32 = arith.constant 0 : i32
    %c0_i32_0 = arith.constant 0 : i32
    return %arg0, %c0_i32 : i32, i32
  }
  func.func @transform_18(%arg0: i32) -> (i32, i32) {
    %c0_i32 = arith.constant 0 : i32
    %c0_i32_0 = arith.constant 0 : i32
    return %arg0, %c0_i32 : i32, i32
  }
  func.func @transform_19(%arg0: i32) -> (i32, i32, i32) {
    %c0_i32 = arith.constant 0 : i32
    %c0_i32_0 = arith.constant 0 : i32
    %c0_i32_1 = arith.constant 0 : i32
    return %arg0, %c0_i32, %c0_i32_0 : i32, i32, i32
  }
}

</mosaic_0001>

<bundles_post_ra>
// kernel: tpu_custom_call.1
= control target key start
LH: loop header
LB: loop body
LE: loop exit
PB: predicated region body
PF: predicated region fallthrough
CT: control target
= control target key end

     0   :  { %s2229_s0 = inlined_call_operand.vmem [shape: f32[1,2,8], index: 0, kind: input, shape index: {}]   ;;  %s2230_s1 = inlined_call_operand.vmem [shape: f32[2,8], index: 1, kind: input, shape index: {}]   ;;  %s2231_s2 = inlined_call_operand.vmem [shape: f32[2,32], index: 2, kind: input, shape index: {}]   ;;  %s2232_s3 = inlined_call_operand.vmem [shape: f32[2,32], index: 3, kind: input, shape index: {}]   ;;  %s2233_s4 = inlined_call_operand.vmem [shape: f32[2,16], index: 4, kind: input, shape index: {}]   ;;  %s2234_s5 = inlined_call_operand.vmem [shape: f32[2,16], index: 5, kind: input, shape index: {}]   ;;  %s2235_s6 = inlined_call_operand.vmem [shape: f32[2,16,8], index: 6, kind: input, shape index: {}]   ;;  %s2236_s7 = inlined_call_operand.vmem [shape: f32[48,128], index: 7, kind: input, shape index: {}]   ;;  %s2237_s8 = inlined_call_operand.vmem [shape: f32[1,128], index: 8, kind: input, shape index: {}]   ;;  %s2238_s9 = inlined_call_operand.vmem [shape: f32[32,44], index: 9, kind: input, shape index: {}]   ;;  %s2239_s10 = inlined_call_operand.vmem [shape: f32[1,44], index: 10, kind: input, shape index: {}]   ;;  %s2240_s11 = inlined_call_operand.vmem [shape: f32[40,8], index: 11, kind: input, shape index: {}]   ;;  %s2241_s12 = inlined_call_operand.vmem [shape: f32[1,8], index: 12, kind: input, shape index: {}]   ;;  %s2242_s13 = inlined_call_operand.hbm [shape: f32[1,2,8], index: 13, kind: output, shape index: {0}]   ;;  %s2243_s14 = inlined_call_operand.hbm [shape: f32[2,8], index: 14, kind: output, shape index: {1}]   ;;  %s2244_s15 = inlined_call_operand.hbm [shape: f32[2,32], index: 15, kind: output, shape index: {2}]   ;;  %s2245_s16 = inlined_call_operand.hbm [shape: f32[2,32], index: 16, kind: output, shape index: {3}]   ;;  %s2246_s17 = inlined_call_operand.hbm [shape: f32[2,16], index: 17, kind: output, shape index: {4}]   ;;  %s2247_s18 = inlined_call_operand.hbm [shape: f32[2,16], index: 18, kind: output, shape index: {5}]   ;;  %s2248_s19 = inlined_call_operand.vmem [shape: f32[2,16,8], index: 19, kind: output, shape index: {6}]  }
   0x1   :  { %2249 = sst [smem:[#allocation16_spill]] %s2229_s0 }
   0x2   :  { %2250 = sst [smem:[#allocation17_spill]] %s2230_s1 }
   0x3   :  { %2251 = sst [smem:[#allocation18_spill]] %s2231_s2 }
   0x4   :  { %2252 = sst [smem:[#allocation19_spill]] %s2232_s3 }
   0x5   :  { %25 = vsyncpa [#allocation3], 0 }
   0x6   :  { %26 = vsyncpa [#allocation5], 0 }
   0x7   :  { %27 = vsyncpa [#allocation8], 0  ;;  %v56_v0 = vld [vmem:[%s2236_s7 + $0x8] sm:$0xff]  ;;  %s2253_s1 = sld [smem:[#allocation17_spill]]  ;;  %vm101_vm0 = vcmask 64512   ;;  %v1724_v2 = vmov 0.0  }
   0x8   :  { %1418 = vmatprep.subr.mxu0 %v1724_v2  ;;  %vm1725_vm1 = vmmov 0   ;;  %v55_v3 = vld [vmem:[%s2236_s7] sm:$0xff]  ;;  %1423 = vmatprep.subr.mxu1 %v1724_v2  ;;  %s2254_s25 = sld [smem:[#allocation16_spill]]  ;;  %v60_v5 = vld [vmem:[%s2236_s7 + $0x28] sm:$0xff] }
   0x9   :  { %1420 = vmatprep.mubr.msk.f32.mxu0 %vm1725_vm1, %v1724_v2  ;;  %1419 = vmatpush3.msra.mxu0 %v56_v0 }
   0xa   :  { %1424 = vmatpush3.msra.mxu1 %v55_v3 }
   0xd   :  { %v91_v1 = vld [vmem:[%s2253_s1] sm:$0x3] }
   0xe   :  { %v100_v4 = vld [vmem:[%s2254_s25] sm:$0x3]  ;;  %1421 = vmatmul.mubr.msk.f32.vlgmr.msra.gmra.mxu0 %vm101_vm0, %v91_v1 }
   0xf   :  { %28 = vsyncpa [#allocation11], 0  ;;  %1425 = vmatprep.mubr.msk.f32.mxu1 %vm1725_vm1, %v1724_v2  ;;  %1428 = vmatprep.subr.mxu0 %v1724_v2  ;;  %v59_v6 = vld [vmem:[%s2236_s7 + $0x20] sm:$0xff]  ;;  %v58_v7 = vld [vmem:[%s2236_s7 + $0x18] sm:$0xff]  ;;  %s2255_s22 = sld [smem:[#allocation18_spill]]  ;;  %vm248_vm2 = vcmask 261120   ;;  %v489_v55 = vlaneseq }
  0x10   :  { %1426 = vmatmul.mubr.msk.f32.vlgmr.msra.gmra.mxu1 %vm101_vm0, %v100_v4  ;;  %1429 = vmatpush3.msra.mxu0 %v60_v5  ;;  %v57_v8 = vld [vmem:[%s2236_s7 + $0x10] sm:$0xff]  ;;  %v1388_v15 = vld [vmem:[%s2237_s8] ss:$0 sm:$0xff]  ;;  %s1726_s23 = smov 32   ;;  %s2256_s3 = sld [smem:[#allocation19_spill]]  ;;  %v71_v32 = vld [vmem:[%s2238_s9 + $0x18] sm:$0xff] }
  0x11   :  { %1430 = vmatprep.subr.mxu0 %v1724_v2  ;;  %1436 = vmatprep.mubr.msk.f32.mxu0 %vm1725_vm1, %v1724_v2  ;;  %v70_v33 = vld [vmem:[%s2238_s9 + $0x10] sm:$0xff]  ;;  %v69_v34 = vld [vmem:[%s2238_s9 + $0x8] sm:$0xff]  ;;  %v68_v35 = vld [vmem:[%s2238_s9] sm:$0xff]  ;;  %s1727_s9 = smov 64   ;;  %vm1289_vm3 = vcmask 254976   ;;  %v1728_v52 = vmov 8  }
  0x12   :  { %1431 = vmatpush3.msra.mxu0 %v59_v6  ;;  %1439 = vmatprep.subr.mxu1 %v1724_v2  ;;  %v1933_v37 = vld [vmem:[%s2235_s6 + $0x8] sm:$0xff]  ;;  %v1944_v43 = vld [vmem:[%s2235_s6] sm:$0xff]  ;;  %v82_v47 = vld [vmem:[%s2240_s11 + $0x18] sm:$0xff]  ;;  %v1729_v53 = vmov 1966171168   ;;  %v1973_v57 = vshrl.u32 %v489_v55, 7 }
  0x13   :  { %1432 = vmatprep.subr.mxu0 %v1724_v2  ;;  %1447 = vmatprep.mubr.msk.f32.mxu1 %vm1725_vm1, %v1724_v2  ;;  %v1936_v38 = vadd.f32 1e-16, %v1933_v37  ;;  %v1947_v44 = vadd.f32 1e-16, %v1944_v43  ;;  %v81_v49 = vld [vmem:[%s2240_s11 + $0x10] sm:$0xff]  ;;  %v80_v50 = vld [vmem:[%s2240_s11 + $0x8] sm:$0xff]  ;;  %v487_v54 = vunpack.c.l.s4 %v1729_v53 }
  0x14   :  { %1433 = vmatpush3.msra.mxu0 %v58_v7  ;;  %1440 = vmatpush3.msra.mxu1 %v71_v32  ;;  %v79_v51 = vld [vmem:[%s2240_s11] sm:$0xff]  ;;  %v1986_v63 = vld [vmem:[%s2235_s6 + $0x18] sm:$0xff]  ;;  %v1998_v6 = vld [vmem:[%s2235_s6 + $0x10] sm:$0xff]  ;;  %vm586_vm4 = vcmask 57344   ;;  %vm447_vm6 = vcmask 99408   ;;  %s1730_s6 = smov 118  }
  0x15   :  { %v92_v9 = vld [vmem:[%s2255_s22] sm:$0x3]  ;;  %1434 = vmatprep.subr.mxu0 %v1724_v2  ;;  %1441 = vmatprep.subr.mxu1 %v1724_v2  ;;  %v541_v41 = vmul.f32 %v1936_v38, %v1936_v38  ;;  %v540_v45 = vmul.f32 %v1947_v44, %v1947_v44  ;;  %v488_v56 = vunpack.c.0.s8 %v487_v54  ;;  %v484_v5 = vadd.f32 1e-16, %v1986_v63  ;;  %s1737_s22 = smov 1   ;;  %s1738_s7 = smov 127  }
  0x16   :  { %1435 = vmatpush3.msra.mxu0 %v57_v8  ;;  %v93_v21 = vld [vmem:[%s2256_s3] sm:$0x3]  ;;  %1442 = vmatpush3.msra.mxu1 %v70_v33  ;;  %s1739_s2 = smov 15   ;;  %s1742_s24 = smov 114  }
  0x17   :  { %1437 = vmatmul.mubr.msk.f32.vlgmr.msra.gmra.mxu0 %vm248_vm2, %v92_v9  ;;  %1450 = vmatprep.subr.mxu0 %v1724_v2  ;;  %v547_v42 = vsel %vm101_vm0, %v541_v41, 0.0  ;;  %v544_v46 = vsel %vm101_vm0, %v540_v45, 0.0  ;;  %v1389_v58 = vld [vmem:[%s2239_s10] ss:$0 sm:$0xff]  ;;  %v1979_v59 = vsub.s32 %v488_v56, %v1973_v57  ;;  %s1752_s1 = smov [#allocation7]  }
  0x18   :  { %1452 = vmatprep.mubr.msk.f32.mxu0 %vm1725_vm1, %v1724_v2  ;;  %1443 = vmatprep.subr.mxu1 %v1724_v2 }
  0x19   :  { %1444 = vmatpush3.msra.mxu1 %v69_v34  ;;  %1499 = vset.pattern.permute.xlu0 %v1728_v52 }
  0x1a   :  { %1445 = vmatprep.subr.mxu1 %v1724_v2 }
  0x1b   :  { %1446 = vmatpush3.msra.mxu1 %v68_v35 }
  0x1c   :  { %1455 = vmatprep.subr.mxu1 %v1724_v2 }
  0xce   :  { %v171_v10 = vpop.f32.mrf.mxu0 }
  0xd0   :  { %v244_v11 = vpop.f32.mrf.mxu1  ;;  %v1422_v12 = vpop.f32.mrf.mxu0 }
  0xd1   :  { %v245_v14 = vadd.f32 %v244_v11, %v171_v10  ;;  %v2007_v11 = vsub.s32 0, %v1973_v57  ;;  %v483_v12 = vadd.f32 1e-16, %v1998_v6 }
  0xd2   :  { %v1427_v13 = vpop.f32.mrf.mxu1 }
  0xd7   :  { %v318_v16 = vpop.f32.mrf.mxu0 }
  0xd8   :  { %v322_v17 = vadd.f32 %v318_v16, %v245_v14 }
  0xd9   :  { %v1438_v18 = vpop.f32.mrf.mxu0 }
  0xda   :  { %v323_v19 = vadd.f32 %v1388_v15, %v322_v17  ;;  %v543_v15 = vmul.f32 %v484_v5, %v484_v5 }
  0xdc   :  { %1514 = vtanh.f32 %v323_v19  ;;  %v324_v22 = vmul.f32 0.5, %v323_v19 }
  0xde   :  { %1516 = vtanh.f32 %v324_v22  ;;  %v553_v22 = vsel %vm101_vm0, %v543_v15, 0.0 }
  0xe9   :  { %v1515_v20 = vpop.eup %1514 }
  0xea   :  { %335 = vrot.lane.b32.xlu0 %v1515_v20, %s1726_s23  ;;  %v542_v20 = vmul.f32 %v483_v12, %v483_v12 }
  0xeb   :  { %v1517_v23 = vpop.eup %1516 }
  0xec   :  { %v326_v24 = vadd.f32 1.0, %v1517_v23 }
  0xee   :  { %330 = vrot.lane.b32.xlu0 %v93_v21, %s1726_s23  ;;  %v327_v25 = vmul.f32 0.5, %v326_v24  ;;  %v550_v24 = vsel %vm101_vm0, %v542_v20, 0.0 }
 0x15c   :  { %v336_v26 = vpop.permute.xlu0 %335 }
 0x15d   :  { %v338_v27 = vmul.f32 %v336_v26, %v327_v25 }
 0x15f   :  { %340 = vrot.lane.b32.xlu1 %v338_v27, %s1726_s23 }
 0x160   :  { %v331_v28 = vpop.permute.xlu0 %330 }
 0x161   :  { %v333_v29 = vmul.f32 %v331_v28, %v327_v25 }
 0x1d1   :  { %v341_v30 = vpop.permute.xlu1 %340 }
 0x1d2   :  { %v1911_v31 = vadd.f32 %v341_v30, %v333_v29 }
 0x1d4   :  { %1518 = vtanh.f32 %v1911_v31 }
 0x1e1   :  { %v1519_v36 = vpop.eup %1518 }
 0x1e2   :  { %346 = vrot.lane.b32.xlu1 %v1519_v36, %s1726_s23  ;;  %s1741_s23 = smov 98  }
 0x206   :  { %548 = vadd.xlane.f32.xlu1 %v547_v42 }
 0x254   :  { %v347_v39 = vpop.permute.xlu1 %346 }
 0x255   :  { %v349_v40 = vmul.f32 %v347_v39, %v327_v25 }
 0x257   :  { %351 = vrot.lane.b32.xlu0 %v349_v40, %s1727_s9  ;;  %s1736_s9 = smov 113  }
 0x276   :  { %545 = vadd.xlane.f32.xlu0 %v544_v46 }
 0x2c9   :  { %v352_v48 = vpop.permute.xlu0 %351 }
 0x2ca   :  { %1448 = vmatmul.mubr.msk.f32.vlgmr.msra.gmra.mxu1 %vm248_vm2, %v352_v48  ;;  %1290 = vst.msk [vmem:[#allocation6] sm:$0x3] %vm1289_vm3, %v352_v48 }
 0x2cb   :  { %1456 = vmatpush3.msra.mxu1 %v82_v47  ;;  %1463 = vmatprep.mubr.msk.f32.mxu1 %vm1725_vm1, %v1724_v2 }
 0x2cc   :  { %1457 = vmatprep.subr.mxu1 %v1724_v2 }
 0x2cd   :  { %1458 = vmatpush3.msra.mxu1 %v81_v49 }
 0x2ce   :  { %1459 = vmatprep.subr.mxu1 %v1724_v2 }
 0x2cf   :  { %1460 = vmatpush3.msra.mxu1 %v80_v50  ;;  %v549_v50 = vpop.xlane.xlu1 %548 }
 0x2d0   :  { %1461 = vmatprep.subr.mxu1 %v1724_v2  ;;  %vm565_vm9 = vcmp.eq.f32.partialorder %v549_v50, inf  ;;  %vm567_vm11 = vcmp.eq.f32.partialorder %v549_v50, 0.0 }
 0x2d1   :  { %1462 = vmatpush3.msra.mxu1 %v79_v51 }
 0x2d2   :  { %1464 = vmatmul.mubr.msk.f32.vlgmr.msra.gmra.mxu1 %vm248_vm2, %v352_v48 }
 0x2ff   :  { %v546_v49 = vpop.xlane.xlu0 %545 }
 0x300   :  { %vm558_vm8 = vcmp.eq.f32.partialorder %v546_v49, inf  ;;  %vm560_vm10 = vcmp.eq.f32.partialorder %v546_v49, 0.0 }
 0x38a   :  { %v421_v60 = vpop.f32.mrf.mxu1 }
 0x38b   :  { %v1981_v61 = vadd.f32 %v1389_v58, %v421_v60 }
 0x38c   :  { %v1449_v62 = vpop.f32.mrf.mxu1 }
 0x38d   :  { %v428_v0 = vand.u32 2147483647, %v1981_v61  ;;  %v492_v1 = vrot.slane %v1981_v61, %v1979_v59  ;;  %vm426_vm7 = vcmp.ne.f32.partialorder %v1981_v61, %v1981_v61 }
 0x38f   :  { %v429_v2 = vsub.f32 0.0, %v428_v0  ;;  %v1992_v3 = vrot.slane %v492_v1, %v1979_v59  ;;  %v493_v4 = vcombine.high %v492_v1, %v492_v1  ;;  %v561_v0 = vand.u32 2147483648, %v546_v49 }
 0x391   :  { %v430_v7 = vmul.f32 1.442695, %v429_v2  ;;  %v510_v8 = vadd.f32 1e-16, %v1992_v3  ;;  %v2002_v9 = vrot.slane %v493_v4, %v1979_v59  ;;  %v568_v4 = vand.u32 2147483648, %v549_v50 }
 0x392   :  { %v2004_v10 = vpop.f32.mrf.mxu1 }
 0x393   :  { %1520 = vpow2.f32 %v430_v7  ;;  %v2010_v13 = vmul.f32 %v510_v8, %v510_v8  ;;  %v511_v14 = vadd.f32 1e-16, %v2002_v9  ;;  %v2016_v18 = vrot.slane %v510_v8, %v2007_v11 }
 0x394   :  { %v1465_v16 = vpop.f32.mrf.mxu1 }
 0x395   :  { %v587_v17 = vsel %vm586_vm4, %v2010_v13, 0.0  ;;  %v2018_v19 = vmul.f32 %v511_v14, %v511_v14  ;;  %v2024_v23 = vrot.slane %v511_v14, %v2007_v11  ;;  %v525_v25 = vmul.f32 %v2016_v18, %v1936_v38 }
 0x396   :  { %588 = vadd.xlane.f32.xlu1 %v587_v17  ;;  %v524_v26 = vmul.f32 %v2016_v18, %v1947_v44  ;;  %v425_v44 = vmax.f32 %v1981_v61, 0.0 }
 0x397   :  { %v590_v21 = vsel %vm586_vm4, %v2018_v19, 0.0  ;;  %v531_v27 = vsel %vm101_vm0, %v525_v25, 0.0  ;;  %v527_v28 = vmul.f32 %v2024_v23, %v484_v5  ;;  %v526_v30 = vmul.f32 %v2024_v23, %v483_v12 }
 0x398   :  { %591 = vadd.xlane.f32.xlu0 %v590_v21  ;;  %v528_v29 = vsel %vm101_vm0, %v524_v26, 0.0 }
 0x399   :  { %v537_v33 = vsel %vm101_vm0, %v527_v28, 0.0  ;;  %v534_v35 = vsel %vm101_vm0, %v526_v30, 0.0 }
 0x39a   :  { %554 = vadd.xlane.f32.xlu1 %v553_v22 }
 0x39c   :  { %551 = vadd.xlane.f32.xlu0 %v550_v24 }
 0x39e   :  { %532 = vadd.xlane.f32.xlu1 %v531_v27 }
 0x3a0   :  { %v1521_v32 = vpop.eup %1520  ;;  %529 = vadd.xlane.f32.xlu0 %v528_v29 }
 0x3a1   :  { %v432_v34 = vadd.f32 1.0, %v1521_v32  ;;  %v435_v36 = vmul.f32 -0.5, %v1521_v32  ;;  %v438_v39 = vand.u32 2147483647, %v1521_v32 }
 0x3a2   :  { %538 = vadd.xlane.f32.xlu1 %v537_v33 }
 0x3a3   :  { %1522 = vlog2.f32 %v432_v34  ;;  %v436_v38 = vadd.f32 1.0, %v435_v36  ;;  %vm439_vm5 = vcmp.lt.f32.partialorder %v438_v39, 0.0004427343 }
 0x3a4   :  { %535 = vadd.xlane.f32.xlu0 %v534_v35  ;;  %1524 = vrsqrt.f32 %v546_v49 }
 0x3a5   :  { %v437_v42 = vmul.f32 %v1521_v32, %v436_v38  ;;  %1526 = vrsqrt.f32 %v549_v50 }
 0x3b0   :  { %v1523_v40 = vpop.eup %1522 }
 0x3b1   :  { %v434_v41 = vmul.f32 0.6931472, %v1523_v40  ;;  %v1525_v56 = vpop.eup %1524 }
 0x3b2   :  { %v1527_v58 = vpop.eup %1526  ;;  %v557_v60 = vmul.f32 %v1525_v56, %v546_v49 }
 0x3b3   :  { %v440_v45 = vsel %vm439_vm5, %v437_v42, %v434_v41  ;;  %v564_v62 = vmul.f32 %v1527_v58, %v549_v50 }
 0x3b4   :  { %v441_v46 = vadd.f32 %v440_v45, %v425_v44  ;;  %v559_v2 = vsel %vm558_vm8, %v546_v49, %v557_v60  ;;  %v641_v49 = vand.u32 127, %v489_v55  ;;  %vm662_vm8 = vcmask 1041409  }
 0x3b5   :  { %v566_v5 = vsel %vm565_vm9, %v549_v50, %v564_v62  ;;  %v562_v14 = vsel %vm560_vm10, %v561_v0, %v559_v2  ;;  %vm666_vm9 = vcmask 123904   ;;  %vm458_vm10 = vcmask 17408  }
 0x3b6   :  { %v2041_v47 = vsel %vm426_vm7, %v1981_v61, %v441_v46  ;;  %v569_v20 = vsel %vm567_vm11, %v568_v4, %v566_v5  ;;  %v2052_v60 = vsub.s32 %v641_v49, %v1973_v57  ;;  %vm651_vm7 = vcmask 130112  }
 0x3b7   :  { %v448_v48 = vsel %vm447_vm6, %v2041_v47, -inf  ;;  %vm699_vm11 = vcmask 7168  }
 0x3b8   :  { %449 = vmax.xlane.f32.xlu1 %v448_v48 }
 0x3ba   :  { %633 = vperm.xlu0 %1499, %v2041_v47  }
 0x41f   :  { %v589_v51 = vpop.xlane.xlu1 %588 }
 0x420   :  { %1528 = vrsqrt.f32 %v589_v51  ;;  %vm595_vm12 = vcmp.eq.f32.partialorder %v589_v51, inf  ;;  %v598_v12 = vand.u32 2147483648, %v589_v51  ;;  %vm597_vm13 = vcmp.eq.f32.partialorder %v589_v51, 0.0 }
 0x421   :  { %v592_v52 = vpop.xlane.xlu0 %591 }
 0x422   :  { %1530 = vrsqrt.f32 %v592_v52  ;;  %vm602_vm14 = vcmp.eq.f32.partialorder %v592_v52, inf  ;;  %v605_v22 = vand.u32 2147483648, %v592_v52  ;;  %vm604_vm15 = vcmp.eq.f32.partialorder %v592_v52, 0.0 }
 0x423   :  { %v555_v53 = vpop.xlane.xlu1 %554 }
 0x424   :  { %1532 = vrsqrt.f32 %v555_v53  ;;  %vm579_vm1 = vcmp.eq.f32.partialorder %v555_v53, inf  ;;  %vm581_vm2 = vcmp.eq.f32.partialorder %v555_v53, 0.0  ;;  %v582_v29 = vand.u32 2147483648, %v555_v53 }
 0x425   :  { %v552_v54 = vpop.xlane.xlu0 %551 }
 0x426   :  { %1534 = vrsqrt.f32 %v552_v54  ;;  %vm572_vm5 = vcmp.eq.f32.partialorder %v552_v54, inf  ;;  %v575_v36 = vand.u32 2147483648, %v552_v54  ;;  %vm574_vm6 = vcmp.eq.f32.partialorder %v552_v54, 0.0 }
 0x427   :  { %v533_v50 = vpop.xlane.xlu1 %532 }
 0x42d   :  { %v1529_v1 = vpop.eup %1528 }
 0x42e   :  { %v594_v7 = vmul.f32 %v1529_v1, %v589_v51  ;;  %v539_v1 = vpop.xlane.xlu1 %538 }
 0x42f   :  { %v1531_v8 = vpop.eup %1530 }
 0x430   :  { %v596_v15 = vsel %vm595_vm12, %v589_v51, %v594_v7  ;;  %v601_v16 = vmul.f32 %v1531_v8, %v592_v52  ;;  %v646_v51 = vadd.s32 4294967288, %v641_v49  ;;  %v1733_v49 = vmov 11  }
 0x431   :  { %v1533_v17 = vpop.eup %1532  ;;  %v599_v21 = vsel %vm597_vm13, %v598_v12, %v596_v15  ;;  %vm707_vm12 = vcmask 121856  }
 0x432   :  { %v610_v24 = vrot.slane %v599_v21, %v2007_v11  ;;  %v603_v25 = vsel %vm602_vm14, %v592_v52, %v601_v16  ;;  %v578_v26 = vmul.f32 %v1533_v17, %v555_v53  ;;  %v530_v52 = vpop.xlane.xlu0 %529  ;;  %v2049_v58 = vsub.s32 %v646_v51, %v1973_v57 }
 0x433   :  { %v1535_v27 = vpop.eup %1534  ;;  %v606_v28 = vsel %vm604_vm15, %v605_v22, %v603_v25 }
 0x434   :  { %v614_v30 = vrot.slane %v606_v28, %v2007_v11  ;;  %v580_v32 = vsel %vm579_vm1, %v555_v53, %v578_v26  ;;  %v571_v33 = vmul.f32 %v1535_v27, %v552_v54  ;;  %v616_v34 = vmul.f32 %v610_v24, %v569_v20 }
 0x435   :  { %v583_v35 = vsel %vm581_vm2, %v582_v29, %v580_v32  ;;  %v615_v38 = vmul.f32 %v610_v24, %v562_v14  ;;  %v1731_v28 = vmov 9   ;;  %v443_v29 = vmul.f32 0.5, %v1981_v61 }
 0x436   :  { %v618_v39 = vmul.f32 %v614_v30, %v583_v35  ;;  %v573_v40 = vsel %vm572_vm5, %v552_v54, %v571_v33  ;;  %v620_v41 = vmax.f32 %v616_v34, 1e-08  ;;  %v536_v5 = vpop.xlane.xlu0 %535  ;;  %1500 = vset.pattern.permute.xlu1 %v1731_v28  ;;  %1501 = vset.pattern.permute.xlu0 %v1731_v28  ;;  %v1732_v61 = vmov 10  }
 0x437   :  { %v576_v42 = vsel %vm574_vm6, %v575_v36, %v573_v40  ;;  %v619_v44 = vmax.f32 %v615_v38, 1e-08 }
 0x438   :  { %v617_v45 = vmul.f32 %v614_v30, %v576_v42  ;;  %1536 = vrcp.f32 %v620_v41  ;;  %v622_v46 = vmax.f32 %v618_v39, 1e-08 }
 0x439   :  { %1538 = vrcp.f32 %v619_v44 }
 0x43a   :  { %1540 = vrcp.f32 %v622_v46  ;;  %v621_v48 = vmax.f32 %v617_v45, 1e-08  ;;  %v634_v22 = vpop.permute.xlu0 %633 }
 0x43c   :  { %1542 = vrcp.f32 %v621_v48 }
 0x441   :  { %v450_v12 = vpop.xlane.xlu1 %449 }
 0x442   :  { %v451_v20 = vsub.f32 %v2041_v47, %v450_v12 }
 0x444   :  { %v452_v25 = vmul.f32 1.442695, %v451_v20 }
 0x445   :  { %v1537_v53 = vpop.eup %1536 }
 0x446   :  { %v1539_v56 = vpop.eup %1538  ;;  %v626_v54 = vmul.f32 %v1537_v53, %v533_v50  ;;  %1544 = vpow2.f32 %v452_v25  ;;  %v1734_v50 = vmov 12  }
 0x447   :  { %v1541_v62 = vpop.eup %1540  ;;  %v624_v0 = vmul.f32 %v1539_v56, %v530_v52  ;;  %1546 = vtanh.f32 %v443_v29  ;;  %v95_v52 = vld [vmem:[%s2234_s5] sm:$0x3]  ;;  %s1740_s5 = smov 106  }
 0x448   :  { %v630_v2 = vmul.f32 %v1541_v62, %v539_v1  ;;  %v650_v55 = vrot.slane %v626_v54, %v2049_v58  ;;  %v1735_v1 = vmov 13  }
 0x449   :  { %v1543_v4 = vpop.eup %1542  ;;  %v645_v7 = vrot.slane %v624_v0, %v2052_v60 }
 0x44a   :  { %v628_v8 = vmul.f32 %v1543_v4, %v536_v5  ;;  %v660_v14 = vrot.slane %v630_v2, %v2049_v58  ;;  %v2080_v4 = vadd.f32 1.0, %v2041_v47 }
 0x44b   :  { %v652_v16 = vsel %vm651_vm7, %v650_v55, %v645_v7 }
 0x44c   :  { %v656_v15 = vrot.slane %v628_v8, %v2052_v60 }
 0x44e   :  { %v661_v17 = vsel %vm651_vm7, %v660_v14, %v656_v15 }
 0x44f   :  { %v663_v21 = vsel %vm662_vm8, %v661_v17, %v652_v16 }
 0x450   :  { %v665_v24 = vmul.f32 %v663_v21, %v634_v22 }
 0x452   :  { %v667_v26 = vsel %vm666_vm9, %v665_v24, -inf }
 0x453   :  { %668 = vmax.xlane.f32.xlu1 %v667_v26  ;;  %v1545_v27 = vpop.eup %1544 }
 0x454   :  { %v1547_v36 = vpop.eup %1546 }
 0x455   :  { %v445_v38 = vadd.f32 1.0, %v1547_v36 }
 0x457   :  { %v2066_v41 = vmul.f32 0.5, %v445_v38 }
 0x459   :  { %v684_v42 = vsub.f32 1.0, %v2066_v41 }
 0x464   :  { %455 = vrot.lane.b32.xlu1 %v1545_v27, %s1730_s6  ;;  %s1750_s6 = smov 96  }
 0x4dc   :  { %v669_v30 = vpop.xlane.xlu1 %668 }
 0x4dd   :  { %v670_v32 = vsub.f32 %v665_v24, %v669_v30 }
 0x4df   :  { %v671_v33 = vmul.f32 1.442695, %v670_v32 }
 0x4e0   :  { %v456_v34 = vpop.permute.xlu1 %455 }
 0x4e1   :  { %1548 = vpow2.f32 %v671_v33  ;;  %v459_v35 = vsel %vm458_vm10, %v456_v34, 0.0 }
 0x4e2   :  { %460 = vadd.xlane.f32.xlu1 %v459_v35 }
 0x4ee   :  { %v1549_v39 = vpop.eup %1548 }
 0x4ef   :  { %v673_v40 = vsel %vm666_vm9, %v1549_v39, 0.0 }
 0x4f0   :  { %674 = vadd.xlane.f32.xlu0 %v673_v40 }
 0x4f3   :  { %680 = vperm.xlu1 %1500, %v2066_v41  }
 0x4f7   :  { %1502 = vset.pattern.permute.xlu1 %v1732_v61  ;;  %v757_v61 = vsub.s32 1, %v1973_v57 }
 0x506   :  { %687 = vperm.xlu0 %1501, %v684_v42  }
 0x56b   :  { %v461_v44 = vpop.xlane.xlu1 %460 }
 0x56c   :  { %1550 = vrcp.f32 %v461_v44 }
 0x56f   :  { %v681_v54 = vpop.permute.xlu1 %680 }
 0x579   :  { %v1551_v45 = vpop.eup %1550  ;;  %v675_v46 = vpop.xlane.xlu0 %674 }
 0x57a   :  { %1552 = vrcp.f32 %v675_v46  ;;  %v463_v48 = vmul.f32 %v1551_v45, %v1545_v27  ;;  %v772_v45 = vrot.slane %v2066_v41, %v1979_v59  ;;  %v805_v46 = vrot.slane %v1992_v3, %v2007_v11 }
 0x57b   :  { %v809_v3 = vrot.slane %v2002_v9, %v2007_v11 }
 0x57c   :  { %711 = vperm.xlu1 %1502, %v463_v48  }
 0x580   :  { %1503 = vset.pattern.permute.xlu1 %v1733_v49 }
 0x581   :  { %716 = vperm.xlu1 %1503, %v463_v48   ;;  %v688_v53 = vpop.permute.xlu0 %687 }
 0x582   :  { %v690_v0 = vmul.f32 %v688_v53, %v95_v52  ;;  %v939_v53 = vrot.slane %v2018_v19, %v2007_v11 }
 0x585   :  { %1504 = vset.pattern.permute.xlu1 %v1734_v50  ;;  %v780_v50 = vrot.slane %v772_v45, %v1979_v59 }
 0x586   :  { %722 = vperm.xlu1 %1504, %v463_v48  }
 0x587   :  { %v1553_v51 = vpop.eup %1552 }
 0x588   :  { %v677_v56 = vmul.f32 %v1553_v51, %v1549_v39 }
 0x58a   :  { %v683_v62 = vmul.f32 %v681_v54, %v677_v56  ;;  %1505 = vset.pattern.permute.xlu1 %v1735_v1  ;;  %v791_v56 = vrot.slane %v780_v50, %v2007_v11  ;;  %v773_v54 = vcombine.high %v772_v45, %v772_v45 }
 0x58c   :  { %v691_v2 = vadd.f32 %v690_v0, %v683_v62 }
 0x58e   :  { %693 = vrot.lane.b32.xlu1 %v691_v2, %s1736_s9 }
 0x592   :  { %696 = vrot.lane.b32.xlu1 %v691_v2, %s1737_s22 }
 0x596   :  { %701 = vrot.lane.b32.xlu1 %v691_v2, %s1738_s7 }
 0x59a   :  { %704 = vrot.lane.b32.xlu1 %v691_v2, %s1739_s2 }
 0x59e   :  { %732 = vperm.xlu1 %1505, %v2080_v4  }
 0x5f7   :  { %v712_v5 = vpop.permute.xlu1 %711 }
 0x5fc   :  { %v717_v55 = vpop.permute.xlu1 %716 }
 0x5fd   :  { %v719_v17 = vmul.f32 %v717_v55, %v691_v2  ;;  %v787_v2 = vrot.slane %v773_v54, %v1979_v59 }
 0x5ff   :  { %v795_v55 = vrot.slane %v787_v2, %v2007_v11 }
 0x601   :  { %v723_v7 = vpop.permute.xlu1 %722 }
 0x605   :  { %v694_v8 = vpop.permute.xlu1 %693 }
 0x609   :  { %v697_v12 = vpop.permute.xlu1 %696 }
 0x60a   :  { %v700_v14 = vsel %vm699_vm11, %v694_v8, %v697_v12 }
 0x60b   :  { %v714_v16 = vmul.f32 %v712_v5, %v700_v14 }
 0x60d   :  { %v702_v15 = vpop.permute.xlu1 %701  ;;  %v720_v22 = vadd.f32 %v719_v17, %v714_v16  ;;  %v1743_v16 = vmov 38  }
 0x60e   :  { %1506 = vset.pattern.permute.xlu1 %v1743_v16 }
 0x611   :  { %v705_v20 = vpop.permute.xlu1 %704 }
 0x612   :  { %v708_v21 = vsel %vm707_vm12, %v702_v15, %v705_v20 }
 0x613   :  { %v725_v24 = vmul.f32 %v723_v7, %v708_v21 }
 0x615   :  { %v726_v25 = vadd.f32 %v725_v24, %v720_v22 }
 0x617   :  { %v727_v26 = vadd.f32 1e-16, %v726_v25 }
 0x619   :  { %1554 = vlog2.f32 %v727_v26  ;;  %v733_v29 = vpop.permute.xlu1 %732 }
 0x626   :  { %v1555_v27 = vpop.eup %1554 }
 0x627   :  { %v729_v28 = vmul.f32 0.6931472, %v1555_v27 }
 0x629   :  { %v735_v30 = vmul.f32 %v733_v29, %v729_v28 }
 0x62b   :  { %v736_v32 = vmul.f32 1.442695, %v735_v30 }
 0x62d   :  { %1556 = vpow2.f32 %v736_v32 }
 0x63a   :  { %v1557_v33 = vpop.eup %1556 }
 0x63b   :  { %v738_v34 = vsel %vm666_vm9, %v1557_v33, 0.0 }
 0x63c   :  { %739 = vadd.xlane.f32.xlu1 %v738_v34 }
 0x6c5   :  { %v740_v35 = vpop.xlane.xlu1 %739 }
 0x6c6   :  { %v741_v36 = vadd.f32 1e-16, %v740_v35 }
 0x6c8   :  { %1558 = vrcp.f32 %v741_v36 }
 0x6d5   :  { %v1559_v38 = vpop.eup %1558 }
 0x6d6   :  { %v743_v39 = vmul.f32 %v1559_v38, %v1557_v33 }
 0x6d8   :  { %v747_v40 = vrot.slane %v743_v39, %v2007_v11  ;;  %1297 = vst.msk [vmem:[#allocation10] sm:$0x3] %vm666_vm9, %v743_v39  ;;  %v758_v44 = vrot.slane %v743_v39, %v757_v61 }
 0x6da   :  { %749 = vbcast.lane.b32.xlu0 %v747_v40, 256 }
 0x6de   :  { %753 = vbcast.lane.b32.xlu0 %v747_v40, 264 }
 0x6e2   :  { %760 = vbcast.lane.b32.xlu0 %v758_v44, 256 }
 0x6e6   :  { %764 = vbcast.lane.b32.xlu0 %v758_v44, 264 }
 0x74c   :  { %v750_v48 = vpop.permute.xlu0 %749 }
 0x74d   :  { %v812_v49 = vmul.f32 %v805_v46, %v750_v48  ;;  %v798_v0 = vmul.f32 %v791_v56, %v750_v48 }
 0x74f   :  { %844 = vrot.lane.b32.xlu1 %v812_v49, %s1740_s5  ;;  %v816_v19 = vsub.f32 1.0, %v798_v0 }
 0x750   :  { %v754_v51 = vpop.permute.xlu0 %753 }
 0x751   :  { %v813_v52 = vmul.f32 %v805_v46, %v754_v51  ;;  %v799_v5 = vmul.f32 %v791_v56, %v754_v51 }
 0x753   :  { %942 = vrot.lane.b32.xlu1 %v939_v53, %s1741_s23  ;;  %846 = vrot.lane.b32.xlu0 %v813_v52, %s1740_s5  ;;  %v817_v7 = vsub.f32 1.0, %v799_v5 }
 0x754   :  { %v761_v62 = vpop.permute.xlu0 %760 }
 0x755   :  { %v814_v1 = vmul.f32 %v809_v3, %v761_v62  ;;  %v800_v8 = vmul.f32 %v795_v55, %v761_v62 }
 0x757   :  { %866 = vrot.lane.b32.xlu1 %v2024_v23, %s1741_s23  ;;  %848 = vrot.lane.b32.xlu0 %v814_v1, %s1740_s5  ;;  %v818_v9 = vsub.f32 1.0, %v800_v8  ;;  %v935_v23 = vrot.slane %v2010_v13, %v2007_v11 }
 0x758   :  { %v765_v12 = vpop.permute.xlu0 %764 }
 0x759   :  { %v801_v14 = vmul.f32 %v795_v55, %v765_v12  ;;  %v815_v59 = vmul.f32 %v809_v3, %v765_v12 }
 0x75b   :  { %824 = vrot.lane.b32.xlu0 %v816_v19, %s1742_s24  ;;  %v819_v15 = vsub.f32 1.0, %v801_v14 }
 0x75f   :  { %826 = vrot.lane.b32.xlu0 %v817_v7, %s1742_s24 }
 0x763   :  { %828 = vrot.lane.b32.xlu0 %v818_v9, %s1742_s24 }
 0x767   :  { %830 = vrot.lane.b32.xlu0 %v819_v15, %s1742_s24 }
 0x76b   :  { %850 = vrot.lane.b32.xlu0 %v815_v59, %s1740_s5 }
 0x76f   :  { %940 = vrot.lane.b32.xlu0 %v935_v23, %s1741_s23 }
 0x773   :  { %864 = vrot.lane.b32.xlu0 %v2016_v18, %s1741_s23 }
 0x7c1   :  { %v845_v17 = vpop.permute.xlu1 %844 }
 0x7c5   :  { %v943_v20 = vpop.permute.xlu1 %942  ;;  %v847_v21 = vpop.permute.xlu0 %846 }
 0x7c6   :  { %v949_v22 = vsel %vm586_vm4, %v943_v20, 0.0 }
 0x7c7   :  { %950 = vadd.xlane.f32.xlu1 %v949_v22 }
 0x7c9   :  { %v849_v24 = vpop.permute.xlu0 %848  ;;  %v867_v51 = vpop.permute.xlu1 %866 }
 0x7cd   :  { %v825_v25 = vpop.permute.xlu0 %824 }
 0x7ce   :  { %v836_v26 = vmul.f32 %v825_v25, %v1944_v43 }
 0x7d0   :  { %v2113_v27 = vadd.f32 %v845_v17, %v836_v26 }
 0x7d1   :  { %v827_v28 = vpop.permute.xlu0 %826 }
 0x7d2   :  { %1298 = vst.msk [vmem:[%s2248_s19] sm:$0xff] %vm101_vm0, %v2113_v27  ;;  %v837_v13 = vmul.f32 %v827_v28, %v1933_v37 }
 0x7d4   :  { %v2121_v18 = vadd.f32 %v847_v21, %v837_v13 }
 0x7d5   :  { %v829_v29 = vpop.permute.xlu0 %828 }
 0x7d6   :  { %1299 = vst.msk [vmem:[%s2248_s19 + $0x8] sm:$0xff] %vm101_vm0, %v2121_v18  ;;  %v838_v43 = vmul.f32 %v829_v29, %v1998_v6  ;;  %v860_v6 = vadd.f32 1e-16, %v2113_v27 }
 0x7d8   :  { %v2129_v30 = vadd.f32 %v849_v24, %v838_v43  ;;  %v886_v44 = vmul.f32 %v860_v6, %v860_v6 }
 0x7d9   :  { %v831_v32 = vpop.permute.xlu0 %830 }
 0x7da   :  { %1300 = vst.msk [vmem:[%s2248_s19 + $0x10] sm:$0xff] %vm101_vm0, %v2129_v30  ;;  %v862_v37 = vadd.f32 1e-16, %v2129_v30  ;;  %v839_v33 = vmul.f32 %v831_v32, %v1986_v63  ;;  %v861_v63 = vadd.f32 1e-16, %v2121_v18  ;;  %v890_v48 = vsel %vm101_vm0, %v886_v44, 0.0 }
 0x7dc   :  { %v888_v34 = vmul.f32 %v862_v37, %v862_v37  ;;  %v887_v49 = vmul.f32 %v861_v63, %v861_v63  ;;  %v872_v53 = vmul.f32 %v867_v51, %v862_v37 }
 0x7dd   :  { %v851_v35 = vpop.permute.xlu0 %850 }
 0x7de   :  { %v2138_v36 = vadd.f32 %v851_v35, %v839_v33  ;;  %v896_v38 = vsel %vm101_vm0, %v888_v34, 0.0  ;;  %v893_v56 = vsel %vm101_vm0, %v887_v49, 0.0  ;;  %v880_v3 = vsel %vm101_vm0, %v872_v53, 0.0 }
 0x7df   :  { %897 = vadd.xlane.f32.xlu1 %v896_v38 }
 0x7e0   :  { %1301 = vst.msk [vmem:[%s2248_s19 + $0x18] sm:$0xff] %vm101_vm0, %v2138_v36  ;;  %v863_v50 = vadd.f32 1e-16, %v2138_v36  ;;  %s1744_s19 = smov 88  }
 0x7e1   :  { %v941_v39 = vpop.permute.xlu0 %940 }
 0x7e2   :  { %v946_v40 = vsel %vm586_vm4, %v941_v39, 0.0  ;;  %v889_v54 = vmul.f32 %v863_v50, %v863_v50  ;;  %v873_v2 = vmul.f32 %v867_v51, %v863_v50  ;;  %vm465_vm4 = vcmask 345408  }
 0x7e3   :  { %947 = vadd.xlane.f32.xlu0 %v946_v40  ;;  %v466_v5 = vsel %vm465_vm4, %v2041_v47, -inf }
 0x7e4   :  { %v899_v0 = vsel %vm101_vm0, %v889_v54, 0.0  ;;  %v883_v19 = vsel %vm101_vm0, %v873_v2, 0.0 }
 0x7e5   :  { %v865_v45 = vpop.permute.xlu0 %864 }
 0x7e6   :  { %v870_v46 = vmul.f32 %v865_v45, %v860_v6  ;;  %v871_v62 = vmul.f32 %v865_v45, %v861_v63 }
 0x7e7   :  { %891 = vadd.xlane.f32.xlu0 %v890_v48 }
 0x7e8   :  { %v874_v52 = vsel %vm101_vm0, %v870_v46, 0.0  ;;  %v877_v1 = vsel %vm101_vm0, %v871_v62, 0.0 }
 0x7e9   :  { %875 = vadd.xlane.f32.xlu1 %v874_v52 }
 0x7eb   :  { %894 = vadd.xlane.f32.xlu0 %v893_v56 }
 0x7ed   :  { %881 = vadd.xlane.f32.xlu1 %v880_v3 }
 0x7ef   :  { %900 = vadd.xlane.f32.xlu0 %v899_v0 }
 0x7f3   :  { %878 = vadd.xlane.f32.xlu0 %v877_v1 }
 0x7f7   :  { %884 = vadd.xlane.f32.xlu0 %v883_v19 }
 0x7fb   :  { %467 = vmax.xlane.f32.xlu0 %v466_v5 }
 0x7fe   :  { %991 = vperm.xlu1 %1506, %v2041_v47  }
 0x850   :  { %v951_v55 = vpop.xlane.xlu1 %950 }
 0x851   :  { %1560 = vrsqrt.f32 %v951_v55  ;;  %vm961_vm13 = vcmp.eq.f32.partialorder %v951_v55, inf  ;;  %v964_v21 = vand.u32 2147483648, %v951_v55  ;;  %vm963_vm15 = vcmp.eq.f32.partialorder %v951_v55, 0.0 }
 0x85e   :  { %v1561_v9 = vpop.eup %1560 }
 0x85f   :  { %v960_v15 = vmul.f32 %v1561_v9, %v951_v55 }
 0x861   :  { %v962_v17 = vsel %vm961_vm13, %v951_v55, %v960_v15 }
 0x862   :  { %v965_v25 = vsel %vm963_vm15, %v964_v21, %v962_v17 }
 0x863   :  { %v973_v37 = vrot.slane %v965_v25, %v2007_v11 }
 0x868   :  { %v898_v7 = vpop.xlane.xlu1 %897 }
 0x869   :  { %1562 = vrsqrt.f32 %v898_v7  ;;  %vm918_vm14 = vcmp.eq.f32.partialorder %v898_v7, inf  ;;  %v921_v26 = vand.u32 2147483648, %v898_v7  ;;  %vm920_vm2 = vcmp.eq.f32.partialorder %v898_v7, 0.0 }
 0x86c   :  { %v948_v8 = vpop.xlane.xlu0 %947 }
 0x86d   :  { %1564 = vrsqrt.f32 %v948_v8  ;;  %vm954_vm1 = vcmp.eq.f32.partialorder %v948_v8, inf  ;;  %v957_v28 = vand.u32 2147483648, %v948_v8  ;;  %vm956_vm5 = vcmp.eq.f32.partialorder %v948_v8, 0.0 }
 0x870   :  { %v892_v12 = vpop.xlane.xlu0 %891 }
 0x871   :  { %1566 = vrsqrt.f32 %v892_v12  ;;  %vm904_vm6 = vcmp.eq.f32.partialorder %v892_v12, inf  ;;  %v907_v34 = vand.u32 2147483648, %v892_v12  ;;  %vm906_vm4 = vcmp.eq.f32.partialorder %v892_v12, 0.0 }
 0x872   :  { %v876_v2 = vpop.xlane.xlu1 %875 }
 0x874   :  { %v895_v14 = vpop.xlane.xlu0 %894 }
 0x875   :  { %1568 = vrsqrt.f32 %v895_v14  ;;  %vm911_vm13 = vcmp.eq.f32.partialorder %v895_v14, inf  ;;  %v914_v45 = vand.u32 2147483648, %v895_v14 }
 0x876   :  { %v1563_v59 = vpop.eup %1562 }
 0x877   :  { %v917_v23 = vmul.f32 %v1563_v59, %v898_v7 }
 0x878   :  { %v901_v16 = vpop.xlane.xlu0 %900 }
 0x879   :  { %1570 = vrsqrt.f32 %v901_v16  ;;  %v919_v22 = vsel %vm918_vm14, %v898_v7, %v917_v23  ;;  %vm913_vm14 = vcmp.eq.f32.partialorder %v895_v14, 0.0  ;;  %vm925_vm15 = vcmp.eq.f32.partialorder %v901_v16, inf }
 0x87a   :  { %v1565_v20 = vpop.eup %1564  ;;  %v922_v43 = vsel %vm920_vm2, %v921_v26, %v919_v22  ;;  %v928_v56 = vand.u32 2147483648, %v901_v16 }
 0x87b   :  { %v953_v24 = vmul.f32 %v1565_v20, %v948_v8  ;;  %v976_v35 = vmul.f32 %v973_v37, %v922_v43 }
 0x87c   :  { %v879_v5 = vpop.xlane.xlu0 %878 }
 0x87d   :  { %v955_v13 = vsel %vm954_vm1, %v948_v8, %v953_v24  ;;  %v980_v48 = vmax.f32 %v976_v35, 1e-08  ;;  %vm927_vm1 = vcmp.eq.f32.partialorder %v901_v16, 0.0 }
 0x87e   :  { %v1567_v29 = vpop.eup %1566  ;;  %v958_v32 = vsel %vm956_vm5, %v957_v28, %v955_v13 }
 0x87f   :  { %v903_v33 = vmul.f32 %v1567_v29, %v892_v12  ;;  %v969_v38 = vrot.slane %v958_v32, %v2007_v11  ;;  %1572 = vrcp.f32 %v980_v48  ;;  %v1748_v48 = vmov 41  }
 0x880   :  { %v885_v59 = vpop.xlane.xlu0 %884 }
 0x881   :  { %v905_v6 = vsel %vm904_vm6, %v892_v12, %v903_v33  ;;  %v882_v12 = vpop.xlane.xlu1 %881 }
 0x882   :  { %v1569_v39 = vpop.eup %1568  ;;  %v908_v40 = vsel %vm906_vm4, %v907_v34, %v905_v6 }
 0x883   :  { %v974_v63 = vmul.f32 %v969_v38, %v908_v40  ;;  %v910_v44 = vmul.f32 %v1569_v39, %v895_v14  ;;  %v1746_v39 = vmov 40   ;;  %v1747_v40 = vmov 43  }
 0x884   :  { %v468_v28 = vpop.xlane.xlu0 %467 }
 0x885   :  { %v912_v46 = vsel %vm911_vm13, %v895_v14, %v910_v44  ;;  %v978_v50 = vmax.f32 %v974_v63, 1e-08  ;;  %v992_v25 = vpop.permute.xlu1 %991  ;;  %v469_v43 = vsub.f32 %v2041_v47, %v468_v28 }
 0x886   :  { %v1571_v49 = vpop.eup %1570  ;;  %v915_v51 = vsel %vm913_vm14, %v914_v45, %v912_v46 }
 0x887   :  { %v975_v52 = vmul.f32 %v969_v38, %v915_v51  ;;  %v924_v53 = vmul.f32 %v1571_v49, %v901_v16  ;;  %1574 = vrcp.f32 %v978_v50  ;;  %v470_v32 = vmul.f32 1.442695, %v469_v43  ;;  %v83_v43 = vld [vmem:[%s2240_s11 + $0x20] sm:$0xff]  ;;  %s1751_s11 = smov [#allocation4]  }
 0x888   :  { %v1749_v49 = vmov 42   ;;  %1451 = vmatpush3.msra.mxu0 %v83_v43  ;;  %s1318_s21 = sshll.u32 %s1751_s11, 4  ;;  %s1319_s21 = int_to_ptr.vmem [resolvable:$true] %s1318_s21 }
 0x889   :  { %v926_v54 = vsel %vm925_vm15, %v901_v16, %v924_v53  ;;  %v979_v3 = vmax.f32 %v975_v52, 1e-08  ;;  %p1601_p1 = scmp.lt.s32.totalorder %s1319_s21, %s1319_s21 }
 0x88a   :  { %v929_v62 = vsel %vm927_vm1, %v928_v56, %v926_v54 }
 0x88b   :  { %v977_v0 = vmul.f32 %v973_v37, %v929_v62  ;;  %1576 = vrcp.f32 %v979_v3 }
 0x88c   :  { %v1573_v19 = vpop.eup %1572 }
 0x88d   :  { %v981_v1 = vmax.f32 %v977_v0, 1e-08  ;;  %v987_v14 = vmul.f32 %v1573_v19, %v882_v12 }
 0x88f   :  { %1578 = vrcp.f32 %v981_v1  ;;  %v1010_v20 = vrot.slane %v987_v14, %v2052_v60 }
 0x890   :  { %1580 = vpow2.f32 %v470_v32 }
 0x894   :  { %v1575_v55 = vpop.eup %1574 }
 0x895   :  { %v983_v9 = vmul.f32 %v1575_v55, %v876_v2 }
 0x897   :  { %v1001_v17 = vrot.slane %v983_v9, %v2052_v60 }
 0x898   :  { %v1577_v7 = vpop.eup %1576 }
 0x899   :  { %v985_v8 = vmul.f32 %v1577_v7, %v879_v5 }
 0x89b   :  { %v1005_v23 = vrot.slane %v985_v8, %v2049_v58 }
 0x89c   :  { %v1579_v15 = vpop.eup %1578 }
 0x89d   :  { %v989_v16 = vmul.f32 %v1579_v15, %v885_v59  ;;  %v1006_v22 = vsel %vm651_vm7, %v1005_v23, %v1001_v17  ;;  %v1581_v37 = vpop.eup %1580 }
 0x89f   :  { %v1014_v21 = vrot.slane %v989_v16, %v2049_v58  ;;  %v1745_v58 = vmov 39  }
 0x8a0   :  { %1507 = vset.pattern.permute.xlu1 %v1745_v58  ;;  %1508 = vset.pattern.permute.xlu0 %v1745_v58 }
 0x8a1   :  { %v1015_v24 = vsel %vm651_vm7, %v1014_v21, %v1010_v20  ;;  %vm1284_vm7 = vcmask 58368  }
 0x8a2   :  { %v1016_v26 = vsel %vm662_vm8, %v1015_v24, %v1006_v22 }
 0x8a3   :  { %v1018_v13 = vmul.f32 %v1016_v26, %v992_v25 }
 0x8a5   :  { %v1019_v29 = vsel %vm666_vm9, %v1018_v13, -inf }
 0x8a6   :  { %1020 = vmax.xlane.f32.xlu0 %v1019_v29 }
 0x8bc   :  { %473 = vrot.lane.b32.xlu0 %v1581_v37, %s1744_s19 }
 0x92f   :  { %v1021_v60 = vpop.xlane.xlu0 %1020 }
 0x930   :  { %v1022_v33 = vsub.f32 %v1018_v13, %v1021_v60 }
 0x932   :  { %v1023_v34 = vmul.f32 1.442695, %v1022_v33 }
 0x933   :  { %v474_v35 = vpop.permute.xlu0 %473 }
 0x934   :  { %1582 = vpow2.f32 %v1023_v34  ;;  %v476_v38 = vsel %vm458_vm10, %v474_v35, 0.0 }
 0x935   :  { %477 = vadd.xlane.f32.xlu1 %v476_v38 }
 0x941   :  { %v1583_v6 = vpop.eup %1582 }
 0x942   :  { %v1025_v47 = vsel %vm666_vm9, %v1583_v6, 0.0 }
 0x943   :  { %1026 = vadd.xlane.f32.xlu0 %v1025_v47 }
 0x946   :  { %1031 = vperm.xlu1 %1507, %v2066_v41   ;;  %v94_v41 = vld [vmem:[%s2233_s4] sm:$0x3] }
 0x94a   :  { %1509 = vset.pattern.permute.xlu1 %v1746_v39 }
 0x959   :  { %1036 = vperm.xlu0 %1508, %v684_v42  }
 0x95d   :  { %1513 = vset.pattern.permute.xlu0 %v1747_v40 }
 0x9be   :  { %v478_v63 = vpop.xlane.xlu1 %477 }
 0x9bf   :  { %1584 = vrcp.f32 %v478_v63 }
 0x9c2   :  { %v1032_v52 = vpop.permute.xlu1 %1031 }
 0x9cc   :  { %v1585_v44 = vpop.eup %1584  ;;  %v1027_v45 = vpop.xlane.xlu0 %1026 }
 0x9cd   :  { %1586 = vrcp.f32 %v1027_v45  ;;  %v480_v46 = vmul.f32 %v1585_v44, %v1581_v37 }
 0x9cf   :  { %1058 = vperm.xlu1 %1509, %v480_v46  }
 0x9d3   :  { %1510 = vset.pattern.permute.xlu1 %v1748_v48 }
 0x9d4   :  { %1063 = vperm.xlu1 %1510, %v480_v46   ;;  %v1037_v42 = vpop.permute.xlu0 %1036 }
 0x9d5   :  { %v1039_v56 = vmul.f32 %v1037_v42, %v94_v41 }
 0x9d8   :  { %1511 = vset.pattern.permute.xlu1 %v1749_v49 }
 0x9d9   :  { %1069 = vperm.xlu1 %1511, %v480_v46  }
 0x9da   :  { %v1587_v50 = vpop.eup %1586 }
 0x9db   :  { %v1029_v51 = vmul.f32 %v1587_v50, %v1583_v6 }
 0x9dd   :  { %v1034_v53 = vmul.f32 %v1032_v52, %v1029_v51  ;;  %1512 = vset.pattern.permute.xlu1 %v1747_v40 }
 0x9df   :  { %v1040_v54 = vadd.f32 %v1039_v56, %v1034_v53 }
 0x9e1   :  { %1042 = vrot.lane.b32.xlu1 %v1040_v54, %s1736_s9  ;;  %s1338_s9 = sshll.u32 %s1752_s1, 4  ;;  %s1339_s9 = int_to_ptr.vmem [resolvable:$true] %s1338_s9 }
 0x9e5   :  { %1045 = vrot.lane.b32.xlu1 %v1040_v54, %s1737_s22  ;;  %s1596_s22 = scalar_lea.vmem %s1319_s21, 32 }
 0x9e6   :  { %p1597_p0 = scmp.ne.s32.totalorder %s1319_s21, %s1596_s22  ;;  %p1602_p2 = scmp.lt.s32.totalorder %s1596_s22, %s1596_s22 }
 0x9e8   :  { %p1603_p3 = por %p1602_p2, %p1601_p1 }
 0x9e9   :  { %1049 = vrot.lane.b32.xlu1 %v1040_v54, %s1738_s7 }
 0x9ea   :  { %p1604_p4 = pnand %p1603_p3, %p1597_p0 }
 0x9ed   :  { %1052 = vrot.lane.b32.xlu1 %v1040_v54, %s1739_s2 }
 0x9f1   :  { %1078 = vperm.xlu1 %1512, %v2080_v4  }
 0xa4a   :  { %v1059_v3 = vpop.permute.xlu1 %1058 }
 0xa4f   :  { %v1064_v62 = vpop.permute.xlu1 %1063 }
 0xa50   :  { %v1066_v7 = vmul.f32 %v1064_v62, %v1040_v54 }
 0xa54   :  { %v1070_v0 = vpop.permute.xlu1 %1069 }
 0xa58   :  { %v1043_v1 = vpop.permute.xlu1 %1042 }
 0xa5c   :  { %v1046_v2 = vpop.permute.xlu1 %1045 }
 0xa5d   :  { %v1048_v19 = vsel %vm699_vm11, %v1043_v1, %v1046_v2 }
 0xa5e   :  { %v1061_v55 = vmul.f32 %v1059_v3, %v1048_v19 }
 0xa60   :  { %v1050_v5 = vpop.permute.xlu1 %1049  ;;  %v1067_v9 = vadd.f32 %v1066_v7, %v1061_v55 }
 0xa64   :  { %v1053_v8 = vpop.permute.xlu1 %1052 }
 0xa65   :  { %v1055_v12 = vsel %vm707_vm12, %v1050_v5, %v1053_v8 }
 0xa66   :  { %v1072_v14 = vmul.f32 %v1070_v0, %v1055_v12 }
 0xa68   :  { %v1073_v15 = vadd.f32 %v1072_v14, %v1067_v9 }
 0xa6a   :  { %v1074_v59 = vadd.f32 1e-16, %v1073_v15 }
 0xa6c   :  { %1588 = vlog2.f32 %v1074_v59  ;;  %v1079_v16 = vpop.permute.xlu1 %1078 }
 0xa79   :  { %v1589_v23 = vpop.eup %1588 }
 0xa7a   :  { %v1076_v4 = vmul.f32 0.6931472, %v1589_v23 }
 0xa7c   :  { %v1081_v17 = vmul.f32 %v1079_v16, %v1076_v4 }
 0xa7e   :  { %v1082_v20 = vmul.f32 1.442695, %v1081_v17 }
 0xa80   :  { %1590 = vpow2.f32 %v1082_v20 }
 0xa8d   :  { %v1591_v21 = vpop.eup %1590 }
 0xa8e   :  { %v1084_v22 = vsel %vm666_vm9, %v1591_v21, 0.0 }
 0xa8f   :  { %1085 = vadd.xlane.f32.xlu1 %v1084_v22 }
 0xb18   :  { %v1086_v24 = vpop.xlane.xlu1 %1085 }
 0xb19   :  { %v1087_v25 = vadd.f32 1e-16, %v1086_v24 }
 0xb1b   :  { %1592 = vrcp.f32 %v1087_v25 }
 0xb28   :  { %v1593_v26 = vpop.eup %1592 }
 0xb29   :  { %v1089_v28 = vmul.f32 %v1593_v26, %v1591_v21 }
 0xb2b   :  { %v1093_v13 = vrot.slane %v1089_v28, %v2007_v11  ;;  %1296 = vst.msk [vmem:[#allocation9] sm:$0x3] %vm666_vm9, %v1089_v28  ;;  %v1104_v29 = vrot.slane %v1089_v28, %v757_v61 }
 0xb2d   :  { %1095 = vbcast.lane.b32.xlu0 %v1093_v13, 256 }
 0xb31   :  { %1099 = vbcast.lane.b32.xlu0 %v1093_v13, 264 }
 0xb35   :  { %1106 = vbcast.lane.b32.xlu0 %v1104_v29, 256 }
 0xb39   :  { %1110 = vbcast.lane.b32.xlu0 %v1104_v29, 264 }
 0xb3d   :  { %1292 = vrot.lane.b32.xlu0 %v1911_v31, %s1750_s6 }
 0xb9f   :  { %v1096_v32 = vpop.permute.xlu0 %1095 }
 0xba0   :  { %v1112_v11 = vmul.f32 %v1096_v32, %v2113_v27 }
 0xba2   :  { %v1116_v60 = vsel %vm101_vm0, %v1112_v11, 0.0 }
 0xba3   :  { %v1100_v37 = vpop.permute.xlu0 %1099 }
 0xba4   :  { %v1113_v58 = vmul.f32 %v1100_v37, %v2121_v18 }
 0xba6   :  { %v1117_v57 = vsel %vm101_vm0, %v1113_v58, 0.0 }
 0xba7   :  { %v1118_v61 = vadd.f32 %v1117_v57, %v1116_v60  ;;  %v1107_v33 = vpop.permute.xlu0 %1106 }
 0xba8   :  { %v1114_v35 = vmul.f32 %v1107_v33, %v2129_v30 }
 0xba9   :  { %v1119_v34 = vrot.slane %v1118_v61, 4 }
 0xbaa   :  { %v1125_v31 = vsel %vm101_vm0, %v1114_v35, 0.0 }
 0xbab   :  { %v1120_v38 = vadd.f32 %v1119_v34, %v1118_v61  ;;  %v1111_v6 = vpop.permute.xlu0 %1110 }
 0xbac   :  { %v1115_v47 = vmul.f32 %v1111_v6, %v2138_v36 }
 0xbad   :  { %v1121_v39 = vrot.slane %v1120_v38, 2 }
 0xbae   :  { %v1126_v27 = vsel %vm101_vm0, %v1115_v47, 0.0 }
 0xbaf   :  { %v1127_v40 = vadd.f32 %v1126_v27, %v1125_v31  ;;  %v1293_v18 = vpop.permute.xlu0 %1292  ;;  %v1122_v44 = vadd.f32 %v1121_v39, %v1120_v38 }
 0xbb0   :  { %1295 = vst.msk [vmem:[#allocation7] sm:$0x3] %vm1289_vm3, %v1293_v18 }
 0xbb1   :  { %v1128_v63 = vrot.slane %v1127_v40, 4  ;;  %v1123_v48 = vrot.slane %v1122_v44, 1 }
 0xbb3   :  { %v1129_v45 = vadd.f32 %v1128_v63, %v1127_v40  ;;  %v1124_v50 = vadd.f32 %v1123_v48, %v1122_v44 }
 0xbb5   :  { %v1130_v46 = vrot.slane %v1129_v45, 2 }
 0xbb7   :  { %v1131_v49 = vadd.f32 %v1130_v46, %v1129_v45 }
 0xbb9   :  { %v1132_v30 = vrot.slane %v1131_v49, 1 }
 0xbbb   :  { %v1133_v41 = vadd.f32 %v1132_v30, %v1131_v49 }
 0xbbd   :  { %v1136_v36 = vsel %vm662_vm8, %v1133_v41, %v1124_v50 }
 0xbbe   :  { %1453 = vmatmul.mubr.msk.f32.vlgmr.msra.gmra.mxu0 %vm101_vm0, %v1136_v36  ;;  %1287 = vst.msk [vmem:[#allocation4] sm:$0x3] %vm1284_vm7, %v1136_v36 }
 0xbbf   :  { %1607 = shalt.err (!%p1604_p4)
}
 0xbc0   :  { %1321 = dma.vmem_to_hbm [thread:$0]  %s1319_s21, 32, %s2243_s14, [#allocation5]  }
 0xbc1   :  { %s1616_s5 = scalar_lea.vmem %s1339_s9, 32  ;;  %p1621_p6 = scmp.lt.s32.totalorder %s1339_s9, %s1339_s9 }
 0xbc2   :  { %p1617_p5 = scmp.ne.s32.totalorder %s1339_s9, %s1616_s5  ;;  %p1622_p7 = scmp.lt.s32.totalorder %s1616_s5, %s1616_s5 }
 0xbc4   :  { %p1623_p8 = por %p1622_p7, %p1621_p6 }
 0xbc6   :  { %p1624_p9 = pnand %p1623_p8, %p1617_p5 }
 0xbc8   :  { %1627 = shalt.err (!%p1624_p9)
}
 0xbc9   :  { %1341 = dma.vmem_to_hbm [thread:$0]  %s1339_s9, 32, %s2245_s16, [#allocation8]  }
 0xbca   :  { %s1753_s25 = smov [#allocation6]  }
 0xbcb   :  { %s1328_s3 = sshll.u32 %s1753_s25, 4  ;;  %s1329_s3 = int_to_ptr.vmem [resolvable:$true] %s1328_s3 }
 0xbcc   :  { %s1636_s8 = scalar_lea.vmem %s1329_s3, 32  ;;  %p1641_p11 = scmp.lt.s32.totalorder %s1329_s3, %s1329_s3 }
 0xbcd   :  { %p1637_p10 = scmp.ne.s32.totalorder %s1329_s3, %s1636_s8  ;;  %p1642_p12 = scmp.lt.s32.totalorder %s1636_s8, %s1636_s8 }
 0xbcf   :  { %p1643_p13 = por %p1642_p12, %p1641_p11 }
 0xbd1   :  { %p1644_p0 = pnand %p1643_p13, %p1637_p10 }
 0xbd3   :  { %1647 = shalt.err (!%p1644_p0)
}
 0xbd4   :  { %1331 = dma.vmem_to_hbm [thread:$0]  %s1329_s3, 32, %s2244_s15, [#allocation5]  }
 0xbd5   :  { %s1754_s27 = smov [#allocation9]   ;;  %s1755_s29 = smov [#allocation10]  }
 0xbd6   :  { %s1348_s28 = sshll.u32 %s1754_s27, 4  ;;  %s1358_s0 = sshll.u32 %s1755_s29, 4  ;;  %s1349_s28 = int_to_ptr.vmem [resolvable:$true] %s1348_s28  ;;  %s1359_s0 = int_to_ptr.vmem [resolvable:$true] %s1358_s0 }
 0xbd7   :  { %s1656_s16 = scalar_lea.vmem %s1349_s28, 32  ;;  %p1661_p2 = scmp.lt.s32.totalorder %s1349_s28, %s1349_s28 }
 0xbd8   :  { %p1657_p1 = scmp.ne.s32.totalorder %s1349_s28, %s1656_s16  ;;  %p1662_p3 = scmp.lt.s32.totalorder %s1656_s16, %s1656_s16 }
 0xbda   :  { %p1663_p4 = por %p1662_p3, %p1661_p2 }
 0xbdc   :  { %p1664_p5 = pnand %p1663_p4, %p1657_p1 }
 0xbde   :  { %1667 = shalt.err (!%p1664_p5)
}
 0xbdf   :  { %1351 = dma.vmem_to_hbm [thread:$0]  %s1349_s28, 32, %s2246_s17, [#allocation8]  }
 0xbe0   :  { %s1676_s10 = scalar_lea.vmem %s1359_s0, 32  ;;  %p1681_p7 = scmp.lt.s32.totalorder %s1359_s0, %s1359_s0 }
 0xbe1   :  { %p1677_p6 = scmp.ne.s32.totalorder %s1359_s0, %s1676_s10  ;;  %p1682_p8 = scmp.lt.s32.totalorder %s1676_s10, %s1676_s10 }
 0xbe3   :  { %p1683_p9 = por %p1682_p8, %p1681_p7 }
 0xbe5   :  { %p1684_p10 = pnand %p1683_p9, %p1677_p6 }
 0xbe7   :  { %1687 = shalt.err (!%p1684_p10)
}
 0xbe8   :  { %1361 = dma.vmem_to_hbm [thread:$0]  %s1359_s0, 32, %s2247_s18, [#allocation11]   ;;  %v1390_v42 = vld [vmem:[%s2241_s12] ss:$0 sm:$0xff] }
 0xbe9   :  { %s1756_s17 = smov [#allocation2]  }
 0xbea   :  { %s1308_s11 = sshll.u32 %s1756_s17, 4  ;;  %s1309_s11 = int_to_ptr.vmem [resolvable:$true] %s1308_s11 }
 0xbeb   :  { %s1696_s18 = scalar_lea.vmem %s1309_s11, 32  ;;  %p1701_p12 = scmp.lt.s32.totalorder %s1309_s11, %s1309_s11 }
 0xbec   :  { %p1697_p11 = scmp.ne.s32.totalorder %s1309_s11, %s1696_s18  ;;  %p1702_p13 = scmp.lt.s32.totalorder %s1696_s18, %s1696_s18 }
 0xbee   :  { %p1703_p0 = por %p1702_p13, %p1701_p12 }
 0xbf0   :  { %p1704_p1 = pnand %p1703_p0, %p1697_p11 }
 0xc7e   :  { %v1205_v51 = vpop.f32.mrf.mxu0 }
 0xc7f   :  { %v1276_v52 = vadd.f32 %v2004_v10, %v1205_v51 }
 0xc80   :  { %v1454_v53 = vpop.f32.mrf.mxu0 }
 0xc81   :  { %v1279_v56 = vadd.f32 %v1390_v42, %v1276_v52 }
 0xc83   :  { %v1280_v54 = vmul.f32 0.5, %v1279_v56 }
 0xc85   :  { %1594 = vtanh.f32 %v1280_v54 }
 0xc92   :  { %v1595_v3 = vpop.eup %1594 }
 0xc93   :  { %v1282_v62 = vadd.f32 1.0, %v1595_v3 }
 0xc95   :  { %v1283_v0 = vmul.f32 0.5, %v1282_v62 }
 0xc97   :  { %1285 = vst.msk [vmem:[#allocation2] sm:$0x3] %vm1284_vm7, %v1283_v0 }
 0xc98   :  { %1707 = shalt.err (!%p1704_p1)
}
 0xc99   :  { %1311 = dma.vmem_to_hbm [thread:$0]  %s1309_s11, 32, %s2242_s13, [#allocation3]  }
 0xc9a   :  { %1716 = dma.done.wait [#allocation3], 32  }
 0xc9b   :  { %1717 = vsyncadd [#allocation3], 4294967264 }
 0xc9c   :  { %1718 = dma.done.wait [#allocation5], 64  }
 0xc9d   :  { %1719 = vsyncadd [#allocation5], 4294967232 }
 0xc9e   :  { %1720 = dma.done.wait [#allocation8], 64  }
 0xc9f   :  { %1721 = vsyncadd [#allocation8], 4294967232 }
 0xca0   :  { %1722 = dma.done.wait [#allocation11], 32  }
 0xca1   :  { %1723 = vsyncadd [#allocation11], 4294967264 }
 0xca2   :  { %1384 = vsyncpa [#allocation3], 1 }
 0xca3   :  { %1385 = vsyncpa [#allocation5], 1 }
 0xca4   :  { %1386 = vsyncpa [#allocation8], 1 }
 0xca5   :  { %1387 = vsyncpa [#allocation11], 1 }

</bundles_post_ra>
